<compile_context>
chip_gen: v6e
topology: v6e:2x2x1
jax: 0.10.0
libtpu: 0.0.40
codegen_flags: <defaults>
</compile_context>

<pallas_src>
import jax
import jax.numpy as jnp
from jax import lax
from jax.experimental import pallas as pl
from jax.experimental.pallas import tpu as pltpu

K = 3        # kernel size
PAD = 1      # padding
KK = K * K   # taps per kernel
# stride = 1, dilation = 1, groups = 1, deform_groups = 1, bias = False


def _pick_spatial_tile(hw):
    """Largest lane tile <= 512 that divides HW (bounds St = HW x T in VMEM)."""
    if hw <= 512:
        return hw
    for t in (512, 384, 256, 128):
        if hw % t == 0:
            return t
    return hw


def trans_kernel(x_ref, crd_ref, ic_ref, w2_ref, out_ref):
    """Fused deformable-conv forward for one (batch, spatial-tile) grid step.

    x_ref  : [C_in, HW]        bf16 input, flattened spatial (full image)
    crd_ref: [2*KK, T]         absolute sample coords for this tile:
                               rows 0..KK-1 = y, rows KK..2*KK-1 = x
    ic_ref : [HW, 2]           input-pixel coords (col0 = y, col1 = x), f32
    w2_ref : [KK, C_out, C_in] bf16 deform-conv weights, w2_ref[k] = tap k slice
    out_ref: [C_out, T]        f32 output
    """
    c_out, T = out_ref.shape
    in_y = ic_ref[:, 0:1]              # [HW, 1]
    in_x = ic_ref[:, 1:2]              # [HW, 1]
    x_bf = x_ref[...]                  # [C_in, HW] bf16

    def tap_body(k, acc):
        py = crd_ref[pl.ds(k, 1), :]          # [1, T] absolute sampled y
        px = crd_ref[pl.ds(KK + k, 1), :]     # [1, T] absolute sampled x

        # Separable bilinear sampling matrix: tent weights in y and x combined
        # with one elementwise multiply. Rows outside the image never get
        # weight -> zero padding, exactly like mmcv DeformConv2d (v1).
        # Tents stay in f32 (coordinate precision); the product is cast to
        # bf16 so the HW-contraction matmul hits the bf16 MXU path.
        sy = jnp.maximum(1.0 - jnp.abs(py - in_y), 0.0)   # [HW, T]
        sx = jnp.maximum(1.0 - jnp.abs(px - in_x), 0.0)   # [HW, T]
        st = (sy * sx).astype(jnp.bfloat16)               # [HW, T]

        # Sample: xs[c, t] = sum_r x[c, r] * St[r, t]  (bf16 MXU, f32 acc).
        xs = jnp.dot(x_bf, st, preferred_element_type=jnp.float32)  # [C_in, T]
        # Weight with this tap's [C_out, C_in] slice and accumulate in f32.
        return acc + jnp.dot(w2_ref[k], xs.astype(jnp.bfloat16),
                             preferred_element_type=jnp.float32)

    acc = lax.fori_loop(0, KK, tap_body, jnp.zeros((c_out, T), jnp.float32))
    out_ref[...] = acc


def trans_forward(x, w1, w2):
    """x: [B, C_in, H, W]; w1: [2*KK, C_in, K, K]; w2: [C_out, C_in, K, K]."""
    B, C_in, H, W = x.shape
    C_out = w2.shape[0]
    HW = H * W

    # conv1 (18-channel offset prediction) in the wrapper: tiny conv, and it
    # avoids shipping a 9x im2col copy of x into the kernel.
    offs = lax.conv_general_dilated(
        x, w1, window_strides=(1, 1), padding=((PAD, PAD), (PAD, PAD)),
        dimension_numbers=("NCHW", "OIHW", "NCHW")).reshape(B, 2 * KK, HW)

    # Fold the static tap displacement and the output-pixel coordinate into
    # the predicted offsets -> absolute sampling coordinates.
    # Layout: rows 0..KK-1 = y coords, rows KK..2*KK-1 = x coords (tap-major).
    oy = jnp.repeat(jnp.arange(H, dtype=jnp.float32), W)          # [HW]
    ox = jnp.tile(jnp.arange(W, dtype=jnp.float32), H)            # [HW]
    ktap = jnp.arange(KK)
    ky = (ktap // K - PAD).astype(jnp.float32)                    # [KK]
    kx = (ktap % K - PAD).astype(jnp.float32)                     # [KK]
    abs_y = offs[:, 0::2, :] + ky[None, :, None] + oy[None, None, :]
    abs_x = offs[:, 1::2, :] + kx[None, :, None] + ox[None, None, :]
    coords = jnp.concatenate([abs_y, abs_x], axis=1)              # [B, 2KK, HW]

    x_bf = x.reshape(B, C_in, HW).astype(jnp.bfloat16)
    in_coords = jnp.stack([oy, ox], axis=1)                       # [HW, 2]
    # Per-tap deform-conv weight slab: w2r[k] = w2[:, :, k//K, k%K].
    w2r = jnp.transpose(w2, (2, 3, 0, 1)).reshape(KK, C_out, C_in)
    w2r = w2r.astype(jnp.bfloat16)

    T_SP = _pick_spatial_tile(HW)
    NSP = HW // T_SP

    grid_spec = pltpu.PrefetchScalarGridSpec(
        num_scalar_prefetch=0,
        grid=(B, NSP),
        in_specs=[
            # x: same block for every spatial tile -> DMA'd once per batch.
            pl.BlockSpec((None, C_in, HW), lambda b, t: (b, 0, 0)),
            pl.BlockSpec((None, 2 * KK, T_SP), lambda b, t: (b, 0, t)),
            pl.BlockSpec((HW, 2), lambda b, t: (0, 0)),
            pl.BlockSpec((KK, C_out, C_in), lambda b, t: (0, 0, 0)),
        ],
        out_specs=pl.BlockSpec((None, C_out, T_SP), lambda b, t: (b, 0, t)),
    )

    out_flat = pl.pallas_call(
        trans_kernel,
        out_shape=jax.ShapeDtypeStruct((B, C_out, HW), jnp.float32),
        grid_spec=grid_spec,
        # Both axes parallel: batch + spatial tiles keep v7x's two TensorCores
        # busy even at B=1; harmless on v5e/v6e. VMEM use at the test config
        # is < 2 MiB; for very large feature maps raise vmem_limit_bytes here.
        compiler_params=pltpu.CompilerParams(
            dimension_semantics=("parallel", "parallel")),
    )(x_bf, coords, in_coords, w2r)

    return out_flat.reshape(B, C_out, H, W)


def ref_trans(x, w1, w2):
    """Pure-JAX reference of Conv2d + DeformConv2d (v1, zero-padded bilinear)."""
    B, C_in, H, W = x.shape
    C_out = w2.shape[0]
    offsets = lax.conv_general_dilated(
        x, w1, window_strides=(1, 1), padding=((PAD, PAD), (PAD, PAD)),
        dimension_numbers=("NCHW", "OIHW", "NCHW"))
    hh = jnp.arange(H, dtype=jnp.float32).reshape(1, H, 1)
    ww = jnp.arange(W, dtype=jnp.float32).reshape(1, 1, W)
    b_idx = jnp.arange(B).reshape(B, 1, 1, 1)
    c_idx = jnp.arange(C_in).reshape(1, C_in, 1, 1)
    out = jnp.zeros((B, C_out, H, W), jnp.float32)
    for k in range(K * K):
        ky, kx = k // K, k % K
        dy = offsets[:, 2 * k]
        dx = offsets[:, 2 * k + 1]
        py = hh + (ky - PAD) + dy
        px = ww + (kx - PAD) + dx
        y0 = jnp.floor(py)
        x0 = jnp.floor(px)
        ly = py - y0
        lx = px - x0
        sampled = jnp.zeros((B, C_in, H, W), jnp.float32)
        for yi, xi, wgt in [(y0, x0, (1 - ly) * (1 - lx)),
                            (y0, x0 + 1, (1 - ly) * lx),
                            (y0 + 1, x0, ly * (1 - lx)),
                            (y0 + 1, x0 + 1, ly * lx)]:
            yi_i = yi.astype(jnp.int32)
            xi_i = xi.astype(jnp.int32)
            valid = (yi_i >= 0) & (yi_i < H) & (xi_i >= 0) & (xi_i < W)
            yc = jnp.clip(yi_i, 0, H - 1)[:, None]
            xc = jnp.clip(xi_i, 0, W - 1)[:, None]
            v = x[b_idx, c_idx, yc, xc]
            sampled = sampled + jnp.where(valid[:, None], wgt[:, None] * v, 0.0)
        out = out + jnp.einsum("oc,bchw->bohw", w2[:, :, ky, kx], sampled)
    return out


if __name__ == "__main__":
    B, C_in, C_out, H, W = 2, 4, 8, 16, 16

    key = jax.random.PRNGKey(0)
    k_x, k_w1, k_w2 = jax.random.split(key, 3)
    x = jax.random.normal(k_x, (B, C_in, H, W), jnp.float32)
    # conv1: (2*K*K, C_in, K, K); small scale so predicted offsets are modest
    w1 = 0.1 * jax.random.normal(k_w1, (2 * KK, C_in, K, K), jnp.float32)
    # conv2 (DeformConv2d): (C_out, C_in, K, K)
    w2 = jax.random.normal(k_w2, (C_out, C_in, K, K), jnp.float32) / (C_in * K * K)

    out = jax.jit(trans_forward)(x, w1, w2)
    jax.block_until_ready(out)

    ref = ref_trans(x, w1, w2)
    assert out.shape == (B, C_out, H, W)
    max_err = float(jnp.max(jnp.abs(out - ref)))
    # bf16 sampling/weight matmuls (f32 accumulation) -> allow a few 1e-3 of error.
    assert jnp.allclose(out, ref, atol=2e-2, rtol=2e-2), max_err

    print("KERNEL_OK")
</pallas_src>

<mosaic_0001>
module attributes {stable_mosaic.version = 11 : i64} {
  func.func @trans_kernel(%arg0: i32, %arg1: i32, %arg2: memref<1x4x256xbf16, #tpu.memory_space<vmem>>, %arg3: memref<1x18x256xf32, #tpu.memory_space<vmem>>, %arg4: memref<256x2xf32, #tpu.memory_space<vmem>>, %arg5: memref<9x8x4xbf16, #tpu.memory_space<vmem>>, %arg6: memref<1x8x256xf32, #tpu.memory_space<vmem>>) attributes {dimension_semantics = [#tpu.dimension_semantics<parallel>, #tpu.dimension_semantics<parallel>], iteration_bounds = array<i64: 2, 1>, scalar_prefetch = 0 : i64, scratch_operands = 0 : i64, tpu.core_type = #tpu.core_type<tc>, window_params = [{transform_indices = @transform_0, window_bounds = array<i64: 1, 4, 256>}, {transform_indices = @transform_1, window_bounds = array<i64: 1, 18, 256>}, {pipeline_mode = #tpu.pipeline_mode<synchronous>, transform_indices = @transform_2, window_bounds = array<i64: 256, 2>}, {pipeline_mode = #tpu.pipeline_mode<synchronous>, transform_indices = @transform_3, window_bounds = array<i64: 9, 8, 4>}, {transform_indices = @transform_4, window_bounds = array<i64: 1, 8, 256>}]} {
    %c0 = arith.constant 0 : index
    %c0_0 = arith.constant 0 : index
    %0 = vector.load %arg4[%c0, %c0_0] : memref<256x2xf32, #tpu.memory_space<vmem>>, vector<256x1xf32>
    %c0_1 = arith.constant 0 : index
    %c1 = arith.constant 1 : index
    %1 = vector.load %arg4[%c0_1, %c1] : memref<256x2xf32, #tpu.memory_space<vmem>>, vector<256x1xf32>
    %c0_2 = arith.constant 0 : index
    %c0_3 = arith.constant 0 : index
    %c0_4 = arith.constant 0 : index
    %2 = vector.load %arg2[%c0_2, %c0_3, %c0_4] : memref<1x4x256xbf16, #tpu.memory_space<vmem>>, vector<1x4x256xbf16>
    %3 = vector.shape_cast %2 : vector<1x4x256xbf16> to vector<4x256xbf16>
    %cst = arith.constant 0.000000e+00 : f32
    %4 = vector.broadcast %cst : f32 to vector<8x256xf32>
    %c0_i32 = arith.constant 0 : i32
    %c9_i32 = arith.constant 9 : i32
    %5 = arith.addi %c0_i32, %c9_i32 : i32
    %c1_i32 = arith.constant 1 : i32
    %6 = scf.for %arg7 = %c0_i32 to %5 step %c1_i32 iter_args(%arg8 = %4) -> (vector<8x256xf32>)  : i32 {
      %c0_9 = arith.constant 0 : index
      %10 = arith.index_cast %arg7 : i32 to index
      %c0_10 = arith.constant 0 : index
      %11 = vector.load %arg3[%c0_9, %10, %c0_10] : memref<1x18x256xf32, #tpu.memory_space<vmem>>, vector<1x1x256xf32>
      %12 = vector.shape_cast %11 : vector<1x1x256xf32> to vector<1x256xf32>
      %c9_i32_11 = arith.constant 9 : i32
      %13 = arith.addi %c9_i32_11, %arg7 : i32
      %c0_12 = arith.constant 0 : index
      %14 = arith.index_cast %13 : i32 to index
      %c0_13 = arith.constant 0 : index
      %15 = vector.load %arg3[%c0_12, %14, %c0_13] : memref<1x18x256xf32, #tpu.memory_space<vmem>>, vector<1x1x256xf32>
      %16 = vector.shape_cast %15 : vector<1x1x256xf32> to vector<1x256xf32>
      %17 = vector.broadcast %12 : vector<1x256xf32> to vector<256x256xf32>
      %18 = vector.broadcast %0 : vector<256x1xf32> to vector<256x256xf32>
      %19 = arith.subf %17, %18 : vector<256x256xf32>
      %20 = math.absf %19 : vector<256x256xf32>
      %cst_14 = arith.constant 1.000000e+00 : f32
      %21 = vector.broadcast %cst_14 : f32 to vector<256x256xf32>
      %22 = arith.subf %21, %20 : vector<256x256xf32>
      %cst_15 = arith.constant 0.000000e+00 : f32
      %23 = vector.broadcast %cst_15 : f32 to vector<256x256xf32>
      %24 = arith.maximumf %22, %23 : vector<256x256xf32>
      %25 = vector.broadcast %16 : vector<1x256xf32> to vector<256x256xf32>
      %26 = vector.broadcast %1 : vector<256x1xf32> to vector<256x256xf32>
      %27 = arith.subf %25, %26 : vector<256x256xf32>
      %28 = math.absf %27 : vector<256x256xf32>
      %cst_16 = arith.constant 1.000000e+00 : f32
      %29 = vector.broadcast %cst_16 : f32 to vector<256x256xf32>
      %30 = arith.subf %29, %28 : vector<256x256xf32>
      %cst_17 = arith.constant 0.000000e+00 : f32
      %31 = vector.broadcast %cst_17 : f32 to vector<256x256xf32>
      %32 = arith.maximumf %30, %31 : vector<256x256xf32>
      %33 = arith.mulf %24, %32 : vector<256x256xf32>
      %34 = arith.truncf %33 : vector<256x256xf32> to vector<256x256xbf16>
      %cst_18 = arith.constant dense<0.000000e+00> : vector<4x256xf32>
      %35 = tpu.matmul %3, %34, %cst_18 {dimension_numbers = #tpu.dot_dimension_numbers<[1], [0], [0], [1], [0, 0, 1, 1], [], []>} : vector<4x256xbf16>, vector<256x256xbf16>, vector<4x256xf32> -> vector<4x256xf32>
      %36 = arith.index_cast %arg7 : i32 to index
      %c0_19 = arith.constant 0 : index
      %c0_20 = arith.constant 0 : index
      %37 = vector.load %arg5[%36, %c0_19, %c0_20] : memref<9x8x4xbf16, #tpu.memory_space<vmem>>, vector<1x8x4xbf16>
      %38 = vector.shape_cast %37 : vector<1x8x4xbf16> to vector<8x4xbf16>
      %39 = arith.truncf %35 : vector<4x256xf32> to vector<4x256xbf16>
      %cst_21 = arith.constant dense<0.000000e+00> : vector<8x256xf32>
      %40 = tpu.matmul %38, %39, %cst_21 {dimension_numbers = #tpu.dot_dimension_numbers<[1], [0], [0], [1], [0, 0, 1, 1], [], []>} : vector<8x4xbf16>, vector<4x256xbf16>, vector<8x256xf32> -> vector<8x256xf32>
      %41 = arith.addf %arg8, %40 : vector<8x256xf32>
      scf.yield %41 : vector<8x256xf32>
    }
    %c9_i32_5 = arith.constant 9 : i32
    %c0_6 = arith.constant 0 : index
    %c0_7 = arith.constant 0 : index
    %c0_8 = arith.constant 0 : index
    %7 = vector.load %arg6[%c0_6, %c0_7, %c0_8] : memref<1x8x256xf32, #tpu.memory_space<vmem>>, vector<1x8x256xf32>
    %8 = vector.shape_cast %7 : vector<1x8x256xf32> to vector<8x256xf32>
    %9 = vector.shape_cast %6 : vector<8x256xf32> to vector<1x8x256xf32>
    tpu.vector_store %arg6[%c0_6, %c0_7, %c0_8], %9 {strides = array<i32>} : memref<1x8x256xf32, #tpu.memory_space<vmem>>, vector<1x8x256xf32>,
    return
  }
  func.func @transform_0(%arg0: i32, %arg1: i32) -> (i32, i32, i32) {
    %c0_i32 = arith.constant 0 : i32
    %c0_i32_0 = arith.constant 0 : i32
    %c0_i32_1 = arith.constant 0 : i32
    return %arg0, %c0_i32, %c0_i32_0 : i32, i32, i32
  }
  func.func @transform_1(%arg0: i32, %arg1: i32) -> (i32, i32, i32) {
    %c0_i32 = arith.constant 0 : i32
    %c0_i32_0 = arith.constant 0 : i32
    return %arg0, %c0_i32, %arg1 : i32, i32, i32
  }
  func.func @transform_2(%arg0: i32, %arg1: i32) -> (i32, i32) {
    %c0_i32 = arith.constant 0 : i32
    %c0_i32_0 = arith.constant 0 : i32
    %c0_i32_1 = arith.constant 0 : i32
    return %c0_i32, %c0_i32_0 : i32, i32
  }
  func.func @transform_3(%arg0: i32, %arg1: i32) -> (i32, i32, i32) {
    %c0_i32 = arith.constant 0 : i32
    %c0_i32_0 = arith.constant 0 : i32
    %c0_i32_1 = arith.constant 0 : i32
    %c0_i32_2 = arith.constant 0 : i32
    return %c0_i32, %c0_i32_0, %c0_i32_1 : i32, i32, i32
  }
  func.func @transform_4(%arg0: i32, %arg1: i32) -> (i32, i32, i32) {
    %c0_i32 = arith.constant 0 : i32
    %c0_i32_0 = arith.constant 0 : i32
    return %arg0, %c0_i32, %arg1 : i32, i32, i32
  }
}

</mosaic_0001>

<bundles_post_ra>
// kernel: trans_forward.1
= control target key start
LH: loop header
LB: loop body
LE: loop exit
PB: predicated region body
PF: predicated region fallthrough
CT: control target
= control target key end

     0   :  { %s1651_s15 = smov 0   ;;  %s1653_s16 = smov 0   ;;  %s2202_s0 = inlined_call_operand.vmem [shape: bf16[2,4,256], index: 0, kind: input, shape index: {}]   ;;  %s2203_s1 = inlined_call_operand.vmem [shape: f32[2,18,256], index: 1, kind: input, shape index: {}]   ;;  %s2204_s2 = inlined_call_operand.vmem [shape: f32[256,2], index: 2, kind: input, shape index: {}]   ;;  %s2205_s3 = inlined_call_operand.vmem [shape: bf16[9,8,4], index: 3, kind: input, shape index: {}]   ;;  %s2206_s4 = inlined_call_operand.vmem [shape: f32[2,8,256], index: 4, kind: output, shape index: {}]  }
   0x1   :  { %s1655_s17 = smov 0  }
   0x2 LB: > { %s26_s18 = sadd.s32 1, %s1606_s16  ;;  %p1471_p0 = scmp.ge.s32.totalorder %s1610_s17, 1  ;;  %s1610_s17 = sphi %s1655_s17, %s14_s17   ;;  %s1606_s16 = sphi %s1653_s16, %s2294_s16   ;;  %s1602_s15 = sphi %s1651_s15, %s2293_s15  }
   0x3   : > { %p28_p1 = scmp.ge.s32.totalorder %s26_s18, 2  ;;  %p193_p2 = scmp.lt.s32.totalorder %s1610_s17, 3 }
   0x5   : > { %s2296_s18 = smov (%p28_p1, %s26_s18), 0  ;;  %p194_p3 = pnand %p1471_p0, %p193_p2 }
   0x7   : > { %197 = sbr.rel (%p194_p3) target bundleno = 752 (0x2f0), region = 36 }
   0xc   : > { %p232_p4 = scmp.lt.s32.totalorder %s1602_s15, 1  ;;  %v1672_v0 = vld [vmem:[%s2204_s2] sm:$0xff]  ;;  %v1677_v1 = vld [vmem:[%s2204_s2 + $0x8] sm:$0xff]  ;;  %v1682_v2 = vld [vmem:[%s2204_s2 + $0x10] sm:$0xff]  ;;  %v1844_v33 = vmov 0.0   ;;  %v1846_v34 = vmov 0.0  }
   0xd   : > { %2237 = vst [vmem:[#allocation2_spill] sm:$0xff] %v1672_v0  ;;  %2238 = vst [vmem:[#allocation3_spill] sm:$0xff] %v1677_v1  ;;  %v1687_v3 = vld [vmem:[%s2204_s2 + $0x18] sm:$0xff]  ;;  %v1692_v4 = vld [vmem:[%s2204_s2 + $0x20] sm:$0xff]  ;;  %s1848_s5 = smov 0  }
   0xe   : > { %2239 = vst [vmem:[#allocation4_spill] sm:$0xff] %v1682_v2  ;;  %2240 = vst [vmem:[#allocation5_spill] sm:$0xff] %v1687_v3  ;;  %v1697_v5 = vld [vmem:[%s2204_s2 + $0x28] sm:$0xff]  ;;  %s2298_s15 = smov (!%p232_p4, %s1602_s15), 1  ;;  %v1702_v6 = vld [vmem:[%s2204_s2 + $0x30] sm:$0xff] }
   0xf   : > { %2241 = vst [vmem:[#allocation6_spill] sm:$0xff] %v1692_v4  ;;  %2242 = vst [vmem:[#allocation7_spill] sm:$0xff] %v1697_v5  ;;  %v1707_v7 = vld [vmem:[%s2204_s2 + $0x38] sm:$0xff]  ;;  %v1712_v8 = vld [vmem:[%s2204_s2 + $0x40] sm:$0xff]  ;;  %s1487_s21 = sshll.u32 %s2298_s15, 2  ;;  %s1491_s22 = smul.u32 48, %s2298_s15 }
  0x10   : > { %2243 = vst [vmem:[#allocation8_spill] sm:$0xff] %v1702_v6  ;;  %2244 = vst [vmem:[#allocation9_spill] sm:$0xff] %v1707_v7  ;;  %v1717_v9 = vld [vmem:[%s2204_s2 + $0x48] sm:$0xff]  ;;  %v1722_v10 = vld [vmem:[%s2204_s2 + $0x50] sm:$0xff]  ;;  %s1488_s29 = sshll.u32 %s2298_s15, 4  ;;  %s236_s28 = scalar_lea.vmem %s2202_s0, %s1487_s21 }
  0x11   : > { %2245 = vst [vmem:[#allocation10_spill] sm:$0xff] %v1712_v8  ;;  %2246 = vst [vmem:[#allocation11_spill] sm:$0xff] %v1717_v9  ;;  %v1727_v11 = vld [vmem:[%s2204_s2 + $0x58] sm:$0xff]  ;;  %v1732_v12 = vld [vmem:[%s2204_s2 + $0x60] sm:$0xff]  ;;  %s1762_s12 = scalar_lea.vmem %s2203_s1, %s1491_s22  ;;  %s1767_s14 = scalar_lea.vmem %s2206_s4, %s1488_s29 }
  0x12   : > { %2247 = vst [vmem:[#allocation12_spill] sm:$0xff] %v1722_v10  ;;  %2248 = vst [vmem:[#allocation13_spill] sm:$0xff] %v1727_v11  ;;  %v1737_v13 = vld [vmem:[%s2204_s2 + $0x68] sm:$0xff]  ;;  %v1742_v14 = vld [vmem:[%s2204_s2 + $0x70] sm:$0xff] }
  0x13   : > { %2249 = vst [vmem:[#allocation14_spill] sm:$0xff] %v1732_v12  ;;  %2250 = vst [vmem:[#allocation15_spill] sm:$0xff] %v1737_v13  ;;  %v1747_v15 = vld [vmem:[%s2204_s2 + $0x78] sm:$0xff]  ;;  %v1752_v16 = vld [vmem:[%s2204_s2 + $0x80] sm:$0xff] }
  0x14   : > { %2251 = vst [vmem:[#allocation16_spill] sm:$0xff] %v1742_v14  ;;  %2252 = vst [vmem:[#allocation17_spill] sm:$0xff] %v1747_v15  ;;  %v1757_v17 = vld [vmem:[%s2204_s2 + $0x88] sm:$0xff]  ;;  %v1772_v18 = vld [vmem:[%s2204_s2 + $0x90] sm:$0xff] }
  0x15   : > { %2253 = vst [vmem:[#allocation18_spill] sm:$0xff] %v1752_v16  ;;  %v1777_v19 = vld [vmem:[%s2204_s2 + $0x98] sm:$0xff]  ;;  %v1782_v20 = vld [vmem:[%s2204_s2 + $0xa0] sm:$0xff]  ;;  %v1790_v21 = vld [vmem:[%s2204_s2 + $0xa8] sm:$0xff] }
  0x16   : > { %2254 = vst [vmem:[#allocation19_spill] sm:$0xff] %v1782_v20  ;;  %2255 = vst [vmem:[#allocation20_spill] sm:$0xff] %v1790_v21  ;;  %v1795_v22 = vld [vmem:[%s2204_s2 + $0xb0] sm:$0xff]  ;;  %v1800_v23 = vld [vmem:[%s2204_s2 + $0xb8] sm:$0xff] }
  0x17   : > { %2256 = vst [vmem:[#allocation21_spill] sm:$0xff] %v1795_v22  ;;  %2257 = vst [vmem:[#allocation22_spill] sm:$0xff] %v1800_v23  ;;  %v1805_v24 = vld [vmem:[%s2204_s2 + $0xc0] sm:$0xff]  ;;  %v1810_v25 = vld [vmem:[%s2204_s2 + $0xc8] sm:$0xff] }
  0x18   : > { %2258 = vst [vmem:[#allocation23_spill] sm:$0xff] %v1805_v24  ;;  %2259 = vst [vmem:[#allocation24_spill] sm:$0xff] %v1810_v25  ;;  %v1815_v26 = vld [vmem:[%s2204_s2 + $0xd0] sm:$0xff]  ;;  %v1820_v27 = vld [vmem:[%s2204_s2 + $0xd8] sm:$0xff] }
  0x19   : > { %2260 = vst [vmem:[#allocation25_spill] sm:$0xff] %v1815_v26  ;;  %2261 = vst [vmem:[#allocation26_spill] sm:$0xff] %v1820_v27  ;;  %v1825_v28 = vld [vmem:[%s2204_s2 + $0xe0] sm:$0xff]  ;;  %v1830_v29 = vld [vmem:[%s2204_s2 + $0xe8] sm:$0xff] }
  0x1a   : > { %2262 = vst [vmem:[#allocation27_spill] sm:$0xff] %v1825_v28  ;;  %v1835_v30 = vld [vmem:[%s2204_s2 + $0xf0] sm:$0xff]  ;;  %v1840_v31 = vld [vmem:[%s2204_s2 + $0xf8] sm:$0xff] }
  0x1b   : > { %v1842_v32 = vld.sshfl [vmem:[%s236_s28] sm:$0x33 pattern:$0x76325410] }
  0x1c LB: >> { %v2272_v16 = vld [vmem:[#allocation18_spill] sm:$0xff]  ;;  %v2273_v15 = vld [vmem:[#allocation17_spill] sm:$0xff]  ;;  %v2274_v14 = vld [vmem:[#allocation16_spill] sm:$0xff]  ;;  %v2213_v35 = vmov 1   ;;  %v2207_v36 = vmov 0   ;;  %s308_s28 = sadd.s32 9, %s1622_s5  ;;  %v319_v37 = vlaneseq  ;;  %v1618_v34 = vphi %v1846_v34, %v2292_v34   ;;  %v1614_v33 = vphi %v1844_v33, %v2291_v33   ;;  %s1622_s5 = sphi %s1848_s5, %s296_s5  }
  0x1d   : >> { %v2269_v21 = vld [vmem:[#allocation20_spill] sm:$0xff]  ;;  %v2271_v20 = vld [vmem:[#allocation19_spill] sm:$0xff]  ;;  %v2276_v12 = vld [vmem:[#allocation14_spill] sm:$0xff]  ;;  %1544 = vset.pattern.permute.xlu0 %v2213_v35  ;;  %1542 = vset.pattern.permute.xlu1 %v2213_v35  ;;  %s309_s6 = sshra.s32 %s308_s28, 3  ;;  %s312_s7 = sand.u32 7, %s308_s28  ;;  %vm1297_vm0 = vcmask 1041408  }
  0x1e   : >> { %v2268_v23 = vld [vmem:[#allocation22_spill] sm:$0xff]  ;;  %v2270_v22 = vld [vmem:[#allocation21_spill] sm:$0xff]  ;;  %v2275_v13 = vld [vmem:[#allocation15_spill] sm:$0xff]  ;;  %805 = vperm.xlu0 %1544, %v2276_v12   ;;  %813 = vperm.xlu1 %1542, %v2274_v14   ;;  %s1490_s8 = sshll.u32 %s309_s6, 4  ;;  %v320_v40 = vshrl.u32 %v319_v37, 7  ;;  %s299_s10 = sshra.s32 %s1622_s5, 3 }
  0x1f   : >> { %v2266_v25 = vld [vmem:[#allocation24_spill] sm:$0xff]  ;;  %v2267_v24 = vld [vmem:[#allocation23_spill] sm:$0xff]  ;;  %v2277_v11 = vld [vmem:[#allocation13_spill] sm:$0xff]  ;;  %1336 = vmatprep.mubr.bf16.mxu1 %v2207_v36  ;;  %s315_s9 = sadd.s32 %s1490_s8, %s312_s7  ;;  %s302_s11 = sand.u32 7, %s1622_s5  ;;  %vm1293_vm1 = vcmask 31744  }
  0x20   : >> { %v2264_v27 = vld [vmem:[#allocation26_spill] sm:$0xff]  ;;  %v2265_v26 = vld [vmem:[#allocation25_spill] sm:$0xff]  ;;  %v2278_v10 = vld [vmem:[#allocation12_spill] sm:$0xff]  ;;  %s316_s21 = scalar_lea.vmem %s1762_s12, %s315_s9  ;;  %s1489_s15 = sshll.u32 %s299_s10, 4  ;;  %v321_v43 = vsub.s32 0, %v320_v40  ;;  %v325_v45 = vsub.s32 1, %v320_v40 }
  0x21   : >> { %v2263_v28 = vld [vmem:[#allocation27_spill] sm:$0xff]  ;;  %v2280_v8 = vld [vmem:[#allocation10_spill] sm:$0xff]  ;;  %v2281_v7 = vld [vmem:[#allocation9_spill] sm:$0xff]  ;;  %s305_s13 = sadd.s32 %s1489_s15, %s302_s11  ;;  %s1482_s20 = sshll.u32 %s1622_s5, 2 }
  0x22   : >> { %v2279_v9 = vld [vmem:[#allocation11_spill] sm:$0xff]  ;;  %v2282_v6 = vld [vmem:[#allocation8_spill] sm:$0xff]  ;;  %v2284_v4 = vld [vmem:[#allocation6_spill] sm:$0xff]  ;;  %789 = vperm.xlu0 %1544, %v2280_v8   ;;  %817 = vperm.xlu1 %1542, %v2273_v15   ;;  %s306_s19 = scalar_lea.vmem %s1762_s12, %s305_s13  ;;  %s1289_s25 = scalar_lea.vmem %s2205_s3, %s1482_s20 }
  0x23   : >> { %v2283_v5 = vld [vmem:[#allocation7_spill] sm:$0xff]  ;;  %v2285_v3 = vld [vmem:[#allocation5_spill] sm:$0xff]  ;;  %v2286_v2 = vld [vmem:[#allocation4_spill] sm:$0xff]  ;;  %s296_s5 = sadd.s32 1, %s1622_s5  }
  0x24   : >> { %v2287_v1 = vld [vmem:[#allocation3_spill] sm:$0xff]  ;;  %v2288_v0 = vld [vmem:[#allocation2_spill] sm:$0xff]  ;;  %p293_p5 = scmp.ge.s32.totalorder %s296_s5, 9  }
  0x25   : >> { %v317_v44 = vld [vmem:[%s316_s21] ss:$8 sm:$0x3] }
  0x26   : >> { %773 = vperm.xlu0 %1544, %v2284_v4   ;;  %1543 = vset.pattern.permute.xlu1 %v2207_v36  ;;  %v1944_v47 = vrot.slane %v317_v44, %v321_v43  ;;  %v1948_v49 = vrot.slane %v317_v44, %v325_v45  ;;  %v307_v52 = vld [vmem:[%s306_s19] ss:$8 sm:$0x3] }
  0x27   : >> { %396 = vperm.xlu1 %1543, %v2275_v13   ;;  %v1958_v57 = vrot.slane %v307_v52, %v321_v43  ;;  %v1964_v61 = vrot.slane %v307_v52, %v325_v45 }
  0x2a   : >> { %757 = vperm.xlu0 %1544, %v2288_v0  }
  0x2b   : >> { %1545 = vset.pattern.permute.xlu1 %v2213_v35 }
  0x2c   : >> { %809 = vperm.xlu1 %1545, %v2275_v13  }
  0x2e   : >> { %869 = vperm.xlu0 %1544, %v2263_v28  }
  0x30   : >> { %1546 = vset.pattern.permute.xlu1 %v2207_v36 }
  0x31   : >> { %381 = vperm.xlu1 %1546, %v2278_v10  }
  0x32   : >> { %853 = vperm.xlu0 %1544, %v2267_v24  }
  0x35   : >> { %1547 = vset.pattern.permute.xlu1 %v2213_v35 }
  0x36   : >> { %837 = vperm.xlu0 %1544, %v2271_v20   ;;  %797 = vperm.xlu1 %1547, %v2278_v10  }
  0x3a   : >> { %1569 = vset.pattern.permute.xlu0 %v2207_v36  ;;  %801 = vperm.xlu1 %1547, %v2277_v11  }
  0x3b   : >> { %401 = vperm.xlu0 %1569, %v2274_v14  }
  0x3e   : >> { %1548 = vset.pattern.permute.xlu1 %v2207_v36 }
  0x3f   : >> { %406 = vperm.xlu0 %1569, %v2273_v15   ;;  %376 = vperm.xlu1 %1548, %v2279_v9  }
  0x43   : >> { %391 = vperm.xlu0 %1569, %v2276_v12   ;;  %1549 = vset.pattern.permute.xlu1 %v2213_v35 }
  0x44   : >> { %793 = vperm.xlu1 %1549, %v2279_v9  }
  0x47   : >> { %386 = vperm.xlu0 %1569, %v2277_v11  }
  0x48   : >> { %1550 = vset.pattern.permute.xlu1 %v2207_v36 }
  0x49   : >> { %361 = vperm.xlu1 %1550, %v2282_v6  }
  0x4b   : >> { %371 = vperm.xlu0 %1569, %v2280_v8   ;;  %v2289_v8 = vmov 0  }
  0x4d   : >> { %1551 = vset.pattern.permute.xlu1 %v2213_v35 }
  0x4e   : >> { %781 = vperm.xlu1 %1551, %v2282_v6  }
  0x4f   : >> { %366 = vperm.xlu0 %1569, %v2281_v7  }
  0x52   : >> { %785 = vperm.xlu1 %1551, %v2281_v7  }
  0x53   : >> { %351 = vperm.xlu0 %1569, %v2284_v4  }
  0x56   : >> { %1552 = vset.pattern.permute.xlu1 %v2207_v36 }
  0x57   : >> { %346 = vperm.xlu0 %1569, %v2285_v3   ;;  %356 = vperm.xlu1 %1552, %v2283_v5  }
  0x5b   : >> { %331 = vperm.xlu0 %1569, %v2288_v0   ;;  %1553 = vset.pattern.permute.xlu1 %v2213_v35 }
  0x5c   : >> { %777 = vperm.xlu1 %1553, %v2283_v5  }
  0x5f   : >> { %486 = vperm.xlu0 %1569, %v1840_v31  }
  0x60   : >> { %1554 = vset.pattern.permute.xlu1 %v2207_v36 }
  0x61   : >> { %341 = vperm.xlu1 %1554, %v2286_v2  }
  0x63   : >> { %471 = vperm.xlu0 %1569, %v2263_v28  }
  0x65   : >> { %1555 = vset.pattern.permute.xlu1 %v2213_v35 }
  0x66   : >> { %765 = vperm.xlu1 %1555, %v2286_v2  }
  0x67   : >> { %466 = vperm.xlu0 %1569, %v2264_v27  }
  0x6a   : >> { %769 = vperm.xlu1 %1555, %v2285_v3  }
  0x6b   : >> { %451 = vperm.xlu0 %1569, %v2267_v24  }
  0x6e   : >> { %1556 = vset.pattern.permute.xlu1 %v2207_v36 }
  0x6f   : >> { %446 = vperm.xlu0 %1569, %v2268_v23   ;;  %336 = vperm.xlu1 %1556, %v2287_v1  }
  0x73   : >> { %431 = vperm.xlu0 %1569, %v2271_v20   ;;  %1557 = vset.pattern.permute.xlu1 %v2213_v35 }
  0x74   : >> { %761 = vperm.xlu1 %1557, %v2287_v1  }
  0x77   : >> { %426 = vperm.xlu0 %1569, %v1777_v19  }
  0x78   : >> { %1558 = vset.pattern.permute.xlu1 %v2207_v36 }
  0x79   : >> { %481 = vperm.xlu1 %1558, %v1835_v30  }
  0x7b   : >> { %411 = vperm.xlu0 %1569, %v2272_v16  }
  0x7d   : >> { %1559 = vset.pattern.permute.xlu1 %v2213_v35 }
  0x7e   : >> { %877 = vperm.xlu1 %1559, %v1835_v30  }
  0x7f   : >> { %1574 = vset.pattern.permute.xlu0 %v2213_v35 }
  0x80   : >> { %821 = vperm.xlu0 %1574, %v2272_v16  }
  0x82   : >> { %881 = vperm.xlu1 %1559, %v1840_v31  }
  0x86   : >> { %1560 = vset.pattern.permute.xlu1 %v2207_v36 }
  0x87   : >> { %476 = vperm.xlu1 %1560, %v1830_v29  }
  0x8b   : >> { %1561 = vset.pattern.permute.xlu1 %v2213_v35 }
  0x8c   : >> { %873 = vperm.xlu1 %1561, %v1830_v29  }
  0x90   : >> { %1562 = vset.pattern.permute.xlu1 %v2207_v36 }
  0x91   : >> { %461 = vperm.xlu1 %1562, %v2265_v26  }
  0x95   : >> { %1563 = vset.pattern.permute.xlu1 %v2213_v35 }
  0x96   : >> { %861 = vperm.xlu1 %1563, %v2265_v26  }
  0x99   : >> { %v814_v38 = vpop.permute.xlu1 %813  ;;  %v806_v39 = vpop.permute.xlu0 %805 }
  0x9a   : >> { %865 = vperm.xlu1 %1563, %v2264_v27   ;;  %v912_v51 = vsub.f32 %v1944_v47, %v814_v38  ;;  %v913_v54 = vsub.f32 %v1948_v49, %v814_v38  ;;  %v908_v55 = vsub.f32 %v1944_v47, %v806_v39  ;;  %v909_v56 = vsub.f32 %v1948_v49, %v806_v39 }
  0x9c   : >> { %v976_v59 = vand.u32 2147483647, %v912_v51  ;;  %v977_v63 = vand.u32 2147483647, %v913_v54  ;;  %v972_v40 = vand.u32 2147483647, %v908_v55 }
  0x9d   : >> { %v818_v41 = vpop.permute.xlu1 %817  ;;  %v790_v42 = vpop.permute.xlu0 %789  ;;  %v973_v44 = vand.u32 2147483647, %v909_v56 }
  0x9e   : >> { %1564 = vset.pattern.permute.xlu1 %v2207_v36  ;;  %v914_v60 = vsub.f32 %v1944_v47, %v818_v41  ;;  %v915_v37 = vsub.f32 %v1948_v49, %v818_v41  ;;  %v1040_v51 = vsub.f32 1.0, %v976_v59  ;;  %v900_v45 = vsub.f32 %v1944_v47, %v790_v42 }
  0x9f   : >> { %456 = vperm.xlu1 %1564, %v2266_v25   ;;  %v901_v52 = vsub.f32 %v1948_v49, %v790_v42  ;;  %v1041_v56 = vsub.f32 1.0, %v977_v63  ;;  %v1036_v1 = vsub.f32 1.0, %v972_v40  ;;  %v1037_v2 = vsub.f32 1.0, %v973_v44 }
  0xa0   : >> { %v978_v54 = vand.u32 2147483647, %v914_v60  ;;  %v979_v0 = vand.u32 2147483647, %v915_v37  ;;  %v1979_v59 = vmax.f32 %v1040_v51, 0.0 }
  0xa1   : >> { %v1942_v46 = vpop.permute.xlu0 %773  ;;  %v964_v5 = vand.u32 2147483647, %v900_v45  ;;  %v965_v6 = vand.u32 2147483647, %v901_v52  ;;  %v1984_v37 = vmax.f32 %v1041_v56, 0.0 }
  0xa2   : >> { %v397_v48 = vpop.permute.xlu1 %396  ;;  %v1042_v60 = vsub.f32 1.0, %v978_v54  ;;  %v1043_v40 = vsub.f32 1.0, %v979_v0  ;;  %v893_v44 = vsub.f32 %v1948_v49, %v1942_v46  ;;  %v1992_v54 = vmax.f32 %v1037_v2, 0.0 }
  0xa3   : >> { %1565 = vset.pattern.permute.xlu1 %v2213_v35  ;;  %v515_v39 = vsub.f32 %v1958_v57, %v397_v48  ;;  %v516_v41 = vsub.f32 %v1964_v61, %v397_v48 }
  0xa4   : >> { %857 = vperm.xlu1 %1565, %v2266_v25   ;;  %v1995_v0 = vmax.f32 %v1042_v60, 0.0 }
  0xa5   : >> { %v1951_v50 = vpop.permute.xlu0 %757  ;;  %v580_v48 = vand.u32 2147483647, %v516_v41  ;;  %v1028_v41 = vsub.f32 1.0, %v964_v5 }
  0xa7   : >> { %v810_v53 = vpop.permute.xlu1 %809  ;;  %v644_v9 = vsub.f32 1.0, %v580_v48  ;;  %v2004_v12 = vmax.f32 %v1028_v41, 0.0 }
  0xa8   : >> { %1566 = vset.pattern.permute.xlu1 %v2207_v36  ;;  %v910_v62 = vsub.f32 %v1944_v47, %v810_v53  ;;  %v911_v43 = vsub.f32 %v1948_v49, %v810_v53  ;;  %v579_v53 = vand.u32 2147483647, %v515_v39 }
  0xa9   : >> { %441 = vperm.xlu1 %1566, %v2270_v22   ;;  %v1961_v58 = vpop.permute.xlu0 %869  ;;  %v708_v13 = vmax.f32 %v644_v9, 0.0 }
  0xaa   : >> { %v974_v55 = vand.u32 2147483647, %v910_v62  ;;  %v975_v3 = vand.u32 2147483647, %v911_v43  ;;  %v1989_v43 = vmax.f32 %v1036_v1, 0.0  ;;  %v643_v51 = vsub.f32 1.0, %v579_v53 }
  0xab   : >> { %v1998_v1 = vmax.f32 %v1043_v40, 0.0 }
  0xac   : >> { %v382_v38 = vpop.permute.xlu1 %381  ;;  %v1038_v62 = vsub.f32 1.0, %v974_v55  ;;  %v1039_v45 = vsub.f32 1.0, %v975_v3  ;;  %v1029_v55 = vsub.f32 1.0, %v965_v6  ;;  %v2000_v3 = vand.u32 2147483647, %v893_v44 }
  0xad   : >> { %1567 = vset.pattern.permute.xlu1 %v2213_v35  ;;  %v1971_v36 = vpop.permute.xlu0 %853  ;;  %v509_v42 = vsub.f32 %v1958_v57, %v382_v38  ;;  %v510_v63 = vsub.f32 %v1964_v61, %v382_v38  ;;  %v707_v5 = vmax.f32 %v643_v51, 0.0  ;;  %v2290_v51 = vmov 1  }
  0xae   : >> { %845 = vperm.xlu1 %1567, %v2270_v22   ;;  %v1102_v10 = vmax.f32 %v1038_v62, 0.0  ;;  %v1103_v6 = vmax.f32 %v1039_v45, 0.0  ;;  %v2006_v60 = vmax.f32 %v1029_v55, 0.0 }
  0xaf   : >> { %v573_v38 = vand.u32 2147483647, %v509_v42  ;;  %v574_v11 = vand.u32 2147483647, %v510_v63 }
  0xb0   : >> { %v2009_v44 = vmul.f32 %v1102_v10, %v707_v5 }
  0xb1   : >> { %v798_v35 = vpop.permute.xlu1 %797  ;;  %v1977_v4 = vpop.permute.xlu0 %837  ;;  %v637_v48 = vsub.f32 1.0, %v573_v38  ;;  %v2016_v38 = vmul.f32 %v1103_v6, %v708_v13 }
  0xb2   : >> { %849 = vperm.xlu1 %1567, %v2268_v23   ;;  %v904_v39 = vsub.f32 %v1944_v47, %v798_v35  ;;  %v905_v52 = vsub.f32 %v1948_v49, %v798_v35 }
  0xb3   : >> { %v701_v10 = vmax.f32 %v637_v48, 0.0 }
  0xb4   : >> { %v968_v35 = vand.u32 2147483647, %v904_v39  ;;  %v969_v53 = vand.u32 2147483647, %v905_v52  ;;  %v638_v39 = vsub.f32 1.0, %v574_v11 }
  0xb5   : >> { %v802_v7 = vpop.permute.xlu1 %801 }
  0xb6   : >> { %v402_v56 = vpop.permute.xlu0 %401  ;;  %1568 = vset.pattern.permute.xlu1 %v2289_v8  ;;  %v906_v42 = vsub.f32 %v1944_v47, %v802_v7  ;;  %v1032_v45 = vsub.f32 1.0, %v968_v35  ;;  %v907_v52 = vsub.f32 %v1948_v49, %v802_v7  ;;  %v702_v35 = vmax.f32 %v638_v39, 0.0 }
  0xb7   : >> { %436 = vperm.xlu1 %1568, %v2269_v21   ;;  %v518_v2 = vsub.f32 %v1964_v61, %v402_v56  ;;  %v517_v62 = vsub.f32 %v1958_v57, %v402_v56  ;;  %v1033_v56 = vsub.f32 1.0, %v969_v53 }
  0xb8   : >> { %v970_v15 = vand.u32 2147483647, %v906_v42  ;;  %v971_v13 = vand.u32 2147483647, %v907_v52 }
  0xb9   : >> { %v582_v41 = vand.u32 2147483647, %v518_v2  ;;  %v581_v5 = vand.u32 2147483647, %v517_v62 }
  0xba   : >> { %v407_v63 = vpop.permute.xlu0 %406  ;;  %v377_v40 = vpop.permute.xlu1 %376  ;;  %v1034_v42 = vsub.f32 1.0, %v970_v15 }
  0xbb   : >> { %v520_v14 = vsub.f32 %v1964_v61, %v407_v63  ;;  %1570 = vset.pattern.permute.xlu1 %v2290_v51  ;;  %v519_v55 = vsub.f32 %v1958_v57, %v407_v63  ;;  %v507_v11 = vsub.f32 %v1958_v57, %v377_v40  ;;  %v508_v16 = vsub.f32 %v1964_v61, %v377_v40 }
  0xbc   : >> { %841 = vperm.xlu1 %1570, %v2269_v21   ;;  %v1096_v21 = vmax.f32 %v1032_v45, 0.0  ;;  %v646_v6 = vsub.f32 1.0, %v582_v41  ;;  %v645_v40 = vsub.f32 1.0, %v581_v5 }
  0xbd   : >> { %v584_v9 = vand.u32 2147483647, %v520_v14  ;;  %v583_v53 = vand.u32 2147483647, %v519_v55  ;;  %v1097_v14 = vmax.f32 %v1033_v56, 0.0 }
  0xbe   : >> { %v392_v20 = vpop.permute.xlu0 %391  ;;  %v572_v23 = vand.u32 2147483647, %v508_v16  ;;  %v2027_v41 = vmul.f32 %v1096_v21, %v701_v10  ;;  %v710_v55 = vmax.f32 %v646_v6, 0.0  ;;  %v709_v10 = vmax.f32 %v645_v40, 0.0 }
  0xbf   : >> { %v648_v22 = vsub.f32 1.0, %v584_v9  ;;  %v513_v7 = vsub.f32 %v1958_v57, %v392_v20  ;;  %v514_v2 = vsub.f32 %v1964_v61, %v392_v20  ;;  %v794_v63 = vpop.permute.xlu1 %793  ;;  %v571_v9 = vand.u32 2147483647, %v507_v11 }
  0xc0   : >> { %1571 = vset.pattern.permute.xlu1 %v2289_v8  ;;  %v903_v20 = vsub.f32 %v1948_v49, %v794_v63  ;;  %v647_v15 = vsub.f32 1.0, %v583_v53  ;;  %v902_v26 = vsub.f32 %v1944_v47, %v794_v63  ;;  %v636_v6 = vsub.f32 1.0, %v572_v23 }
  0xc1   : >> { %v577_v48 = vand.u32 2147483647, %v513_v7  ;;  %v578_v62 = vand.u32 2147483647, %v514_v2  ;;  %421 = vperm.xlu1 %1571, %v1772_v18   ;;  %v712_v39 = vmax.f32 %v648_v22, 0.0  ;;  %v2031_v2 = vmul.f32 %v1097_v14, %v702_v35 }
  0xc2   : >> { %v387_v24 = vpop.permute.xlu0 %386  ;;  %v1035_v22 = vsub.f32 1.0, %v971_v13  ;;  %v635_v11 = vsub.f32 1.0, %v571_v9  ;;  %v967_v53 = vand.u32 2147483647, %v903_v20  ;;  %v711_v35 = vmax.f32 %v647_v15, 0.0 }
  0xc3   : >> { %v642_v25 = vsub.f32 1.0, %v578_v62  ;;  %v511_v45 = vsub.f32 %v1958_v57, %v387_v24  ;;  %v512_v52 = vsub.f32 %v1964_v61, %v387_v24  ;;  %v641_v56 = vsub.f32 1.0, %v577_v48 }
  0xc4   : >> { %v2029_v7 = vpop.permute.xlu1 %361  ;;  %v1171_v21 = vmul.f32 %v1998_v1, %v712_v39  ;;  %v1098_v24 = vmax.f32 %v1034_v42, 0.0  ;;  %v1169_v48 = vmul.f32 %v1984_v37, %v710_v55  ;;  %v2040_v28 = vmax.f32 %v635_v11, 0.0 }
  0xc5   : >> { %v575_v5 = vand.u32 2147483647, %v511_v45  ;;  %v576_v16 = vand.u32 2147483647, %v512_v52  ;;  %1572 = vset.pattern.permute.xlu1 %v2290_v51  ;;  %v706_v62 = vmax.f32 %v642_v25, 0.0  ;;  %v705_v14 = vmax.f32 %v641_v56, 0.0 }
  0xc6   : >> { %v372_v27 = vpop.permute.xlu0 %371  ;;  %829 = vperm.xlu1 %1572, %v1772_v18   ;;  %v1099_v45 = vmax.f32 %v1035_v22, 0.0  ;;  %v966_v42 = vand.u32 2147483647, %v902_v26  ;;  %v1219_v40 = vpack.c.bf16 %v1171_v21, %v1169_v48  ;;  %v700_v23 = vmax.f32 %v636_v6, 0.0 }
  0xc7   : >> { %v639_v13 = vsub.f32 1.0, %v575_v5  ;;  %v640_v52 = vsub.f32 1.0, %v576_v16  ;;  %v505_v25 = vsub.f32 %v1958_v57, %v372_v27  ;;  %v506_v63 = vsub.f32 %v1964_v61, %v372_v27 }
  0xc8   : >> { %v1165_v1 = vmul.f32 %v1992_v54, %v706_v62  ;;  %v1031_v39 = vsub.f32 1.0, %v967_v53  ;;  %v1164_v37 = vmul.f32 %v1989_v43, %v705_v14  ;;  %1247 = vmatprep.subr.bf16.mxu0 %v1219_v40  ;;  %v1168_v56 = vmul.f32 %v1979_v59, %v709_v10 }
  0xc9   : >> { %v782_v9 = vpop.permute.xlu1 %781  ;;  %v569_v20 = vand.u32 2147483647, %v505_v25  ;;  %v570_v15 = vand.u32 2147483647, %v506_v63  ;;  %v703_v55 = vmax.f32 %v639_v13, 0.0  ;;  %v1170_v27 = vmul.f32 %v1995_v0, %v711_v35 }
  0xca   : >> { %833 = vperm.xlu1 %1572, %v1777_v19   ;;  %v367_v22 = vpop.permute.xlu0 %366  ;;  %v704_v5 = vmax.f32 %v640_v52, 0.0  ;;  %v896_v54 = vsub.f32 %v1944_v47, %v782_v9  ;;  %v897_v26 = vsub.f32 %v1948_v49, %v782_v9  ;;  %v1217_v43 = vpack.c.bf16 %v2016_v38, %v1165_v1 }
  0xcb   : >> { %v503_v16 = vsub.f32 %v1958_v57, %v367_v22  ;;  %v634_v62 = vsub.f32 1.0, %v570_v15  ;;  %v1218_v21 = vpack.c.bf16 %v1170_v27, %v1168_v56  ;;  %v504_v6 = vsub.f32 %v1964_v61, %v367_v22 }
  0xcc   : >> { %v1030_v59 = vsub.f32 1.0, %v966_v42  ;;  %v501_v0 = vsub.f32 %v1958_v57, %v2029_v7  ;;  %v502_v10 = vsub.f32 %v1964_v61, %v2029_v7  ;;  %v633_v53 = vsub.f32 1.0, %v569_v20 }
  0xcd   : >> { %v786_v11 = vpop.permute.xlu1 %785  ;;  %1248 = vmatpush1.bf16.msra.mxu0 %v1218_v21  ;;  %v567_v35 = vand.u32 2147483647, %v503_v16  ;;  %v568_v14 = vand.u32 2147483647, %v504_v6  ;;  %v1216_v13 = vpack.c.bf16 %v2009_v44, %v1164_v37  ;;  %v1095_v38 = vmax.f32 %v1031_v39, 0.0 }
  0xce   : >> { %1573 = vset.pattern.permute.xlu1 %v2289_v8  ;;  %v898_v48 = vsub.f32 %v1944_v47, %v786_v11  ;;  %v1162_v52 = vmul.f32 %v1098_v24, %v703_v55  ;;  %v1163_v8 = vmul.f32 %v1099_v45, %v704_v5  ;;  %v961_v25 = vand.u32 2147483647, %v897_v26  ;;  %1249 = vmatprep.subr.bf16.mxu0 %v1217_v43  ;;  %v352_v39 = vpop.permute.xlu0 %351 }
  0xcf   : >> { %416 = vperm.xlu1 %1573, %v1757_v17   ;;  %v698_v63 = vmax.f32 %v634_v62, 0.0  ;;  %v960_v9 = vand.u32 2147483647, %v896_v54  ;;  %v899_v1 = vsub.f32 %v1948_v49, %v786_v11  ;;  %v565_v40 = vand.u32 2147483647, %v501_v0 }
  0xd0   : >> { %v962_v7 = vand.u32 2147483647, %v898_v48  ;;  %v566_v20 = vand.u32 2147483647, %v502_v10  ;;  %v697_v15 = vmax.f32 %v633_v53, 0.0  ;;  %v632_v56 = vsub.f32 1.0, %v568_v14 }
  0xd1   : >> { %v1094_v44 = vmax.f32 %v1030_v59, 0.0  ;;  %v631_v37 = vsub.f32 1.0, %v567_v35  ;;  %1250 = vmatpush1.bf16.msra.mxu0 %v1216_v13  ;;  %v963_v24 = vand.u32 2147483647, %v899_v1  ;;  %v1159_v55 = vmul.f32 %v1095_v38, %v700_v23 }
  0xd2   : >> { %v2061_v42 = vpop.permute.xlu1 %356  ;;  %v1026_v45 = vsub.f32 1.0, %v962_v7  ;;  %v1025_v27 = vsub.f32 1.0, %v961_v25  ;;  %v498_v22 = vsub.f32 %v1964_v61, %v352_v39  ;;  %v1215_v5 = vpack.c.bf16 %v1163_v8, %v2031_v2 }
  0xd3   : >> { %1575 = vset.pattern.permute.xlu1 %v2290_v51  ;;  %v1157_v54 = vmul.f32 %v2006_v60, %v698_v63  ;;  %v1024_v26 = vsub.f32 1.0, %v960_v9  ;;  %v1027_v16 = vsub.f32 1.0, %v963_v24  ;;  %v1214_v51 = vpack.c.bf16 %v1162_v52, %v2027_v41 }
  0xd4   : >> { %825 = vperm.xlu1 %1575, %v1757_v17   ;;  %v629_v11 = vsub.f32 1.0, %v565_v40  ;;  %v630_v62 = vsub.f32 1.0, %v566_v20  ;;  %v1156_v21 = vmul.f32 %v2004_v12, %v697_v15  ;;  %v696_v6 = vmax.f32 %v632_v56, 0.0  ;;  %1251 = vmatprep.subr.bf16.mxu0 %v1215_v5 }
  0xd5   : >> { %v695_v59 = vmax.f32 %v631_v37, 0.0  ;;  %v1090_v23 = vmax.f32 %v1026_v45, 0.0  ;;  %v1091_v0 = vmax.f32 %v1027_v16, 0.0  ;;  %1252 = vmatpush1.bf16.msra.mxu0 %v1214_v51  ;;  %v500_v2 = vsub.f32 %v1964_v61, %v2061_v42 }
  0xd6   : >> { %v892_v60 = vsub.f32 %v1944_v47, %v1942_v46  ;;  %v1089_v10 = vmax.f32 %v1025_v27, 0.0  ;;  %v562_v53 = vand.u32 2147483647, %v498_v22  ;;  %v1158_v41 = vmul.f32 %v1094_v44, %v2040_v28 }
  0xd7   : >> { %v778_v43 = vpop.permute.xlu1 %777  ;;  %v1088_v35 = vmax.f32 %v1024_v26, 0.0  ;;  %v497_v12 = vsub.f32 %v1958_v57, %v352_v39  ;;  %v1213_v14 = vpack.c.bf16 %v1159_v55, %v1157_v54  ;;  %v1021_v13 = vsub.f32 1.0, %v2000_v3  ;;  %v347_v26 = vpop.permute.xlu0 %346 }
  0xd8   : >> { %v694_v48 = vmax.f32 %v630_v62, 0.0  ;;  %v1155_v38 = vmul.f32 %v1091_v0, %v696_v6  ;;  %v693_v52 = vmax.f32 %v629_v11, 0.0  ;;  %v1154_v8 = vmul.f32 %v1090_v23, %v695_v59 }
  0xd9   : >> { %v564_v25 = vand.u32 2147483647, %v500_v2  ;;  %1253 = vmatprep.subr.bf16.mxu0 %v1213_v14  ;;  %v1212_v63 = vpack.c.bf16 %v1158_v41, %v1156_v21  ;;  %v626_v46 = vsub.f32 1.0, %v562_v53  ;;  %v499_v7 = vsub.f32 %v1958_v57, %v2061_v42 }
  0xda   : >> { %v1153_v1 = vmul.f32 %v1089_v10, %v694_v48  ;;  %v894_v28 = vsub.f32 %v1944_v47, %v778_v43  ;;  %v956_v40 = vand.u32 2147483647, %v892_v60  ;;  %v1152_v20 = vmul.f32 %v1088_v35, %v693_v52 }
  0xdb   : >> { %v561_v15 = vand.u32 2147483647, %v497_v12  ;;  %1254 = vmatpush1.bf16.msra.mxu0 %v1212_v63  ;;  %v895_v3 = vsub.f32 %v1948_v49, %v778_v43  ;;  %v628_v37 = vsub.f32 1.0, %v564_v25  ;;  %v1085_v39 = vmax.f32 %v1021_v13, 0.0  ;;  %v332_v63 = vpop.permute.xlu0 %331 }
  0xdc   : >> { %v342_v9 = vpop.permute.xlu1 %341  ;;  %v958_v56 = vand.u32 2147483647, %v894_v28  ;;  %v1211_v44 = vpack.c.bf16 %v1155_v38, %v1153_v1  ;;  %v1210_v45 = vpack.c.bf16 %v1154_v8, %v1152_v20  ;;  %v690_v55 = vmax.f32 %v626_v46, 0.0 }
  0xdd   : >> { %v959_v24 = vand.u32 2147483647, %v895_v3  ;;  %v563_v27 = vand.u32 2147483647, %v499_v7  ;;  %v1020_v5 = vsub.f32 1.0, %v956_v40  ;;  %v625_v42 = vsub.f32 1.0, %v561_v15 }
  0xde   : >> { %1255 = vmatprep.subr.bf16.mxu0 %v1211_v44  ;;  %v1022_v16 = vsub.f32 1.0, %v958_v56  ;;  %v495_v51 = vsub.f32 %v1958_v57, %v347_v26  ;;  %v496_v11 = vsub.f32 %v1964_v61, %v347_v26  ;;  %v692_v62 = vmax.f32 %v628_v37, 0.0 }
  0xdf   : >> { %v1023_v54 = vsub.f32 1.0, %v959_v24  ;;  %1256 = vmatpush1.bf16.msra.mxu0 %v1210_v45  ;;  %v1149_v6 = vmul.f32 %v1085_v39, %v690_v55  ;;  %v627_v43 = vsub.f32 1.0, %v563_v27  ;;  %v1084_v23 = vmax.f32 %v1020_v5, 0.0 }
  0xe0   : >> { %v689_v0 = vmax.f32 %v625_v42, 0.0  ;;  %v1086_v60 = vmax.f32 %v1022_v16, 0.0  ;;  %v559_v41 = vand.u32 2147483647, %v495_v51  ;;  %v560_v35 = vand.u32 2147483647, %v496_v11  ;;  %v487_v51 = vpop.permute.xlu0 %486 }
  0xe1   : >> { %v766_v22 = vpop.permute.xlu1 %765  ;;  %v1087_v21 = vmax.f32 %v1023_v54, 0.0  ;;  %v691_v12 = vmax.f32 %v627_v43, 0.0  ;;  %v493_v14 = vsub.f32 %v1958_v57, %v342_v9  ;;  %v494_v13 = vsub.f32 %v1964_v61, %v342_v9 }
  0xe2   : >> { %v888_v10 = vsub.f32 %v1944_v47, %v766_v22  ;;  %v889_v53 = vsub.f32 %v1948_v49, %v766_v22  ;;  %v884_v38 = vsub.f32 %v1944_v47, %v1951_v50  ;;  %v1148_v52 = vmul.f32 %v1084_v23, %v689_v0 }
  0xe3   : >> { %v1151_v2 = vmul.f32 %v1087_v21, %v692_v62  ;;  %v1150_v1 = vmul.f32 %v1086_v60, %v691_v12  ;;  %v623_v40 = vsub.f32 1.0, %v559_v41  ;;  %v624_v20 = vsub.f32 1.0, %v560_v35 }
  0xe4   : >> { %v952_v46 = vand.u32 2147483647, %v888_v10  ;;  %v953_v7 = vand.u32 2147483647, %v889_v53  ;;  %v489_v15 = vsub.f32 %v1958_v57, %v332_v63  ;;  %v557_v3 = vand.u32 2147483647, %v493_v14 }
  0xe5   : >> { %v770_v59 = vpop.permute.xlu1 %769  ;;  %v1209_v48 = vpack.c.bf16 %v1151_v2, %v1149_v6  ;;  %v558_v56 = vand.u32 2147483647, %v494_v13  ;;  %v885_v37 = vsub.f32 %v1948_v49, %v1951_v50  ;;  %v948_v24 = vand.u32 2147483647, %v884_v38 }
  0xe6   : >> { %v890_v8 = vsub.f32 %v1944_v47, %v770_v59  ;;  %v891_v28 = vsub.f32 %v1948_v49, %v770_v59  ;;  %v1016_v39 = vsub.f32 1.0, %v952_v46  ;;  %v1017_v55 = vsub.f32 1.0, %v953_v7 }
  0xe7   : >> { %1257 = vmatprep.subr.bf16.mxu0 %v1209_v48  ;;  %v1208_v22 = vpack.c.bf16 %v1150_v1, %v1148_v52  ;;  %v687_v42 = vmax.f32 %v623_v40, 0.0  ;;  %v688_v54 = vmax.f32 %v624_v20, 0.0  ;;  %v490_v26 = vsub.f32 %v1964_v61, %v332_v63 }
  0xe8   : >> { %v954_v9 = vand.u32 2147483647, %v890_v8  ;;  %v955_v44 = vand.u32 2147483647, %v891_v28  ;;  %v553_v16 = vand.u32 2147483647, %v489_v15  ;;  %v551_v59 = vsub.f32 %v1958_v57, %v487_v51 }
  0xe9   : >> { %v621_v11 = vsub.f32 1.0, %v557_v3  ;;  %v622_v62 = vsub.f32 1.0, %v558_v56  ;;  %1258 = vmatpush1.bf16.msra.mxu0 %v1208_v22  ;;  %v949_v43 = vand.u32 2147483647, %v885_v37  ;;  %v1012_v50 = vsub.f32 1.0, %v948_v24 }
  0xea   : >> { %v337_v25 = vpop.permute.xlu1 %336  ;;  %v1018_v45 = vsub.f32 1.0, %v954_v9  ;;  %v1019_v27 = vsub.f32 1.0, %v955_v44  ;;  %v940_v0 = vsub.f32 %v1944_v47, %v1961_v58  ;;  %v1080_v2 = vmax.f32 %v1016_v39, 0.0 }
  0xeb   : >> { %v491_v23 = vsub.f32 %v1958_v57, %v337_v25  ;;  %v1081_v60 = vmax.f32 %v1017_v55, 0.0  ;;  %v492_v10 = vsub.f32 %v1964_v61, %v337_v25  ;;  %v941_v53 = vsub.f32 %v1948_v49, %v1961_v58 }
  0xec   : >> { %v1082_v21 = vmax.f32 %v1018_v45, 0.0  ;;  %v1083_v6 = vmax.f32 %v1019_v27, 0.0  ;;  %v554_v41 = vand.u32 2147483647, %v490_v26  ;;  %v617_v35 = vsub.f32 1.0, %v553_v16 }
  0xed   : >> { %v552_v12 = vsub.f32 %v1964_v61, %v487_v51  ;;  %v685_v13 = vmax.f32 %v621_v11, 0.0  ;;  %v686_v48 = vmax.f32 %v622_v62, 0.0  ;;  %v1013_v8 = vsub.f32 1.0, %v949_v43  ;;  %v472_v11 = vpop.permute.xlu0 %471 }
  0xee   : >> { %v1146_v38 = vmul.f32 %v1082_v21, %v687_v42  ;;  %v1147_v52 = vmul.f32 %v1083_v6, %v688_v54  ;;  %v1076_v63 = vmax.f32 %v1012_v50, 0.0  ;;  %v615_v1 = vand.u32 2147483647, %v551_v59 }
  0xef   : >> { %v762_v5 = vpop.permute.xlu1 %761  ;;  %v555_v46 = vand.u32 2147483647, %v491_v23  ;;  %v2103_v7 = vand.u32 2147483647, %v940_v0  ;;  %v1144_v28 = vmul.f32 %v1080_v2, %v685_v13  ;;  %v1145_v25 = vmul.f32 %v1081_v60, %v686_v48 }
  0xf0   : >> { %v556_v40 = vand.u32 2147483647, %v492_v10  ;;  %v2105_v20 = vand.u32 2147483647, %v941_v53  ;;  %v618_v58 = vsub.f32 1.0, %v554_v41  ;;  %v886_v9 = vsub.f32 %v1944_v47, %v762_v5 }
  0xf1   : >> { %v616_v15 = vand.u32 2147483647, %v552_v12  ;;  %v681_v3 = vmax.f32 %v617_v35, 0.0  ;;  %v887_v56 = vsub.f32 %v1948_v49, %v762_v5  ;;  %v1207_v44 = vpack.c.bf16 %v1147_v52, %v1145_v25 }
  0xf2   : >> { %v1206_v37 = vpack.c.bf16 %v1146_v38, %v1144_v28  ;;  %v1077_v45 = vmax.f32 %v1013_v8, 0.0  ;;  %v679_v39 = vsub.f32 1.0, %v615_v1  ;;  %v619_v55 = vsub.f32 1.0, %v555_v46 }
  0xf3   : >> { %v950_v27 = vand.u32 2147483647, %v886_v9  ;;  %v620_v22 = vsub.f32 1.0, %v556_v40  ;;  %v951_v42 = vand.u32 2147483647, %v887_v56  ;;  %1259 = vmatprep.subr.bf16.mxu0 %v1207_v44  ;;  %v682_v16 = vmax.f32 %v618_v58, 0.0 }
  0xf4   : >> { %v482_v14 = vpop.permute.xlu1 %481  ;;  %v680_v51 = vsub.f32 1.0, %v616_v15  ;;  %1260 = vmatpush1.bf16.msra.mxu0 %v1206_v37  ;;  %v1140_v21 = vmul.f32 %v1076_v63, %v681_v3  ;;  %v545_v6 = vsub.f32 %v1958_v57, %v472_v11  ;;  %v683_v23 = vmax.f32 %v619_v55, 0.0 }
  0xf5   : >> { %v1014_v62 = vsub.f32 1.0, %v950_v27  ;;  %v550_v5 = vsub.f32 %v1964_v61, %v482_v14  ;;  %v1015_v43 = vsub.f32 1.0, %v951_v42  ;;  %v549_v50 = vsub.f32 %v1958_v57, %v482_v14 }
  0xf6   : >> { %v684_v10 = vmax.f32 %v620_v22, 0.0  ;;  %v546_v12 = vsub.f32 %v1964_v61, %v472_v11  ;;  %v1141_v52 = vmul.f32 %v1077_v45, %v682_v16  ;;  %v743_v1 = vmax.f32 %v679_v39, 0.0 }
  0xf7   : >> { %v1078_v0 = vmax.f32 %v1014_v62, 0.0  ;;  %v1079_v53 = vmax.f32 %v1015_v43, 0.0  ;;  %v614_v48 = vand.u32 2147483647, %v550_v5  ;;  %v613_v63 = vand.u32 2147483647, %v549_v50 }
  0xf8   : >> { %v744_v58 = vmax.f32 %v680_v51, 0.0  ;;  %v609_v56 = vand.u32 2147483647, %v545_v6  ;;  %v610_v44 = vand.u32 2147483647, %v546_v12 }
  0xf9   : >> { %v878_v24 = vpop.permute.xlu1 %877  ;;  %v1142_v13 = vmul.f32 %v1078_v0, %v683_v23  ;;  %v1143_v8 = vmul.f32 %v1079_v53, %v684_v10  ;;  %v678_v37 = vsub.f32 1.0, %v614_v48  ;;  %v677_v55 = vsub.f32 1.0, %v613_v63 }
  0xfa   : >> { %v944_v54 = vsub.f32 %v1944_v47, %v878_v24  ;;  %v945_v26 = vsub.f32 %v1948_v49, %v878_v24  ;;  %v673_v62 = vsub.f32 1.0, %v609_v56  ;;  %v674_v43 = vsub.f32 1.0, %v610_v44 }
  0xfb   : >> { %v1204_v25 = vpack.c.bf16 %v1142_v13, %v1140_v21  ;;  %v1205_v9 = vpack.c.bf16 %v1143_v8, %v1141_v52  ;;  %v742_v5 = vmax.f32 %v678_v37, 0.0  ;;  %v741_v50 = vmax.f32 %v677_v55, 0.0  ;;  %v467_v52 = vpop.permute.xlu0 %466 }
  0xfc   : >> { %v1009_v2 = vand.u32 2147483647, %v945_v26  ;;  %v1008_v41 = vand.u32 2147483647, %v944_v54  ;;  %v1068_v54 = vsub.f32 1.0, %v2103_v7  ;;  %v1069_v26 = vsub.f32 1.0, %v2105_v20 }
  0xfd   : >> { %v882_v59 = vpop.permute.xlu1 %881  ;;  %1261 = vmatprep.subr.bf16.mxu0 %v1205_v9  ;;  %v737_v48 = vmax.f32 %v673_v62, 0.0  ;;  %v544_v9 = vsub.f32 %v1964_v61, %v467_v52  ;;  %v932_v62 = vsub.f32 %v1944_v47, %v1971_v36 }
  0xfe   : >> { %v946_v60 = vsub.f32 %v1944_v47, %v882_v59  ;;  %v947_v35 = vsub.f32 %v1948_v49, %v882_v59  ;;  %v1073_v46 = vsub.f32 1.0, %v1009_v2  ;;  %v1072_v15 = vsub.f32 1.0, %v1008_v41  ;;  %1262 = vmatpush1.bf16.msra.mxu0 %v1204_v25 }
  0xff   : >> { %v1132_v20 = vmax.f32 %v1068_v54, 0.0  ;;  %v1133_v41 = vmax.f32 %v1069_v26, 0.0  ;;  %v608_v26 = vand.u32 2147483647, %v544_v9 }
 0x100   : >> { %v1010_v38 = vand.u32 2147483647, %v946_v60  ;;  %v1011_v14 = vand.u32 2147483647, %v947_v35  ;;  %v1137_v39 = vmax.f32 %v1073_v46, 0.0  ;;  %v1136_v16 = vmax.f32 %v1072_v15, 0.0 }
 0x101   : >> { %v1196_v56 = vmul.f32 %v1132_v20, %v737_v48 }
 0x102   : >> { %v1074_v28 = vsub.f32 1.0, %v1010_v38  ;;  %v477_v40 = vpop.permute.xlu1 %476  ;;  %v1075_v3 = vsub.f32 1.0, %v1011_v14  ;;  %v1201_v0 = vmul.f32 %v1137_v39, %v742_v5  ;;  %v1200_v10 = vmul.f32 %v1136_v16, %v741_v50  ;;  %v452_v16 = vpop.permute.xlu0 %451 }
 0x103   : >> { %v547_v24 = vsub.f32 %v1958_v57, %v477_v40  ;;  %v548_v22 = vsub.f32 %v1964_v61, %v477_v40  ;;  %v738_v38 = vmax.f32 %v674_v43, 0.0  ;;  %v543_v14 = vsub.f32 %v1958_v57, %v467_v52 }
 0x104   : >> { %v1138_v45 = vmax.f32 %v1074_v28, 0.0  ;;  %v1139_v27 = vmax.f32 %v1075_v3, 0.0  ;;  %v1244_v28 = vcombine.high %v1842_v32, %v1842_v32  ;;  %v933_v5 = vsub.f32 %v1948_v49, %v1971_v36 }
 0x105   : >> { %v611_v42 = vand.u32 2147483647, %v547_v24  ;;  %v612_v51 = vand.u32 2147483647, %v548_v22  ;;  %v1197_v44 = vmul.f32 %v1133_v41, %v738_v38  ;;  %v607_v55 = vand.u32 2147483647, %v543_v14 }
 0x106   : >> { %v1203_v21 = vmul.f32 %v1139_v27, %v744_v58  ;;  %v1202_v59 = vmul.f32 %v1138_v45, %v743_v1  ;;  %1279 = vmatprep.mubr.bf16.mxu0 %v1244_v28  ;;  %v996_v36 = vand.u32 2147483647, %v932_v62  ;;  %v997_v41 = vand.u32 2147483647, %v933_v5 }
 0x107   : >> { %v874_v11 = vpop.permute.xlu1 %873  ;;  %v675_v2 = vsub.f32 1.0, %v611_v42  ;;  %v676_v7 = vsub.f32 1.0, %v612_v51 }
 0x108   : >> { %v942_v6 = vsub.f32 %v1944_v47, %v874_v11  ;;  %v943_v23 = vsub.f32 %v1948_v49, %v874_v11  ;;  %v1235_v12 = vpack.c.bf16 %v1203_v21, %v1201_v0  ;;  %v1234_v63 = vpack.c.bf16 %v1202_v59, %v1200_v10 }
 0x109   : >> { %v739_v1 = vmax.f32 %v675_v2, 0.0  ;;  %v740_v25 = vmax.f32 %v676_v7, 0.0  ;;  %v537_v21 = vsub.f32 %v1958_v57, %v452_v16  ;;  %v671_v10 = vsub.f32 1.0, %v607_v55 }
 0x10a   : >> { %v1006_v60 = vand.u32 2147483647, %v942_v6  ;;  %v1007_v53 = vand.u32 2147483647, %v943_v23  ;;  %1263 = vmatprep.subr.bf16.mxu0 %v1235_v12  ;;  %v538_v6 = vsub.f32 %v1964_v61, %v452_v16  ;;  %v672_v7 = vsub.f32 1.0, %v608_v26 }
 0x10b   : >> { %1264 = vmatpush2.bf16.msra.mxu0 %v1234_v63  ;;  %v735_v28 = vmax.f32 %v671_v10, 0.0  ;;  %v1061_v55 = vsub.f32 1.0, %v997_v41 }
 0x10c   : >> { %v1070_v35 = vsub.f32 1.0, %v1006_v60  ;;  %v462_v13 = vpop.permute.xlu1 %461  ;;  %v1071_v8 = vsub.f32 1.0, %v1007_v53  ;;  %v602_v48 = vand.u32 2147483647, %v538_v6 }
 0x10d   : >> { %v541_v58 = vsub.f32 %v1958_v57, %v462_v13  ;;  %v542_v15 = vsub.f32 %v1964_v61, %v462_v13  ;;  %v601_v13 = vand.u32 2147483647, %v537_v21  ;;  %v1125_v21 = vmax.f32 %v1061_v55, 0.0 }
 0x10e   : >> { %v1134_v46 = vmax.f32 %v1070_v35, 0.0  ;;  %v1135_v40 = vmax.f32 %v1071_v8, 0.0 }
 0x10f   : >> { %v605_v22 = vand.u32 2147483647, %v541_v58  ;;  %v606_v39 = vand.u32 2147483647, %v542_v15 }
 0x110   : >> { %v1198_v3 = vmul.f32 %v1134_v46, %v739_v1  ;;  %v1199_v37 = vmul.f32 %v1135_v40, %v740_v25  ;;  %v736_v25 = vmax.f32 %v672_v7, 0.0 }
 0x111   : >> { %v862_v24 = vpop.permute.xlu1 %861  ;;  %v669_v2 = vsub.f32 1.0, %v605_v22  ;;  %v670_v60 = vsub.f32 1.0, %v606_v39 }
 0x112   : >> { %v936_v45 = vsub.f32 %v1944_v47, %v862_v24  ;;  %v937_v27 = vsub.f32 %v1948_v49, %v862_v24  ;;  %v1233_v42 = vpack.c.bf16 %v1199_v37, %v1197_v44  ;;  %v1232_v54 = vpack.c.bf16 %v1198_v3, %v1196_v56 }
 0x113   : >> { %v733_v63 = vmax.f32 %v669_v2, 0.0  ;;  %v734_v14 = vmax.f32 %v670_v60, 0.0  ;;  %v1060_v24 = vsub.f32 1.0, %v996_v36 }
 0x114   : >> { %v1000_v51 = vand.u32 2147483647, %v936_v45  ;;  %v1001_v11 = vand.u32 2147483647, %v937_v27  ;;  %1265 = vmatprep.subr.bf16.mxu0 %v1233_v42  ;;  %v665_v45 = vsub.f32 1.0, %v601_v13  ;;  %v666_v27 = vsub.f32 1.0, %v602_v48 }
 0x115   : >> { %v866_v43 = vpop.permute.xlu1 %865  ;;  %1266 = vmatpush2.bf16.msra.mxu0 %v1232_v54  ;;  %v1124_v5 = vmax.f32 %v1060_v24, 0.0 }
 0x116   : >> { %v1064_v50 = vsub.f32 1.0, %v1000_v51  ;;  %v1065_v59 = vsub.f32 1.0, %v1001_v11  ;;  %v938_v23 = vsub.f32 %v1944_v47, %v866_v43  ;;  %v939_v0 = vsub.f32 %v1948_v49, %v866_v43 }
 0x117   : >> { %v729_v6 = vmax.f32 %v665_v45, 0.0  ;;  %v730_v43 = vmax.f32 %v666_v27, 0.0 }
 0x118   : >> { %v1002_v53 = vand.u32 2147483647, %v938_v23  ;;  %v1003_v20 = vand.u32 2147483647, %v939_v0  ;;  %v1128_v35 = vmax.f32 %v1064_v50, 0.0  ;;  %v1129_v12 = vmax.f32 %v1065_v59, 0.0  ;;  %v447_v50 = vpop.permute.xlu0 %446 }
 0x11a   : >> { %v1066_v38 = vsub.f32 1.0, %v1002_v53  ;;  %v1067_v52 = vsub.f32 1.0, %v1003_v20  ;;  %v457_v8 = vpop.permute.xlu1 %456  ;;  %v1192_v15 = vmul.f32 %v1128_v35, %v733_v63  ;;  %v1193_v9 = vmul.f32 %v1129_v12, %v734_v14 }
 0x11b   : >> { %v539_v1 = vsub.f32 %v1958_v57, %v457_v8  ;;  %v540_v46 = vsub.f32 %v1964_v61, %v457_v8  ;;  %v535_v53 = vsub.f32 %v1958_v57, %v447_v50  ;;  %v536_v20 = vsub.f32 %v1964_v61, %v447_v50 }
 0x11c   : >> { %v1130_v40 = vmax.f32 %v1066_v38, 0.0  ;;  %v1131_v58 = vmax.f32 %v1067_v52, 0.0  ;;  %v1188_v35 = vmul.f32 %v1124_v5, %v729_v6  ;;  %v1189_v12 = vmul.f32 %v1125_v21, %v730_v43  ;;  %v432_v52 = vpop.permute.xlu0 %431 }
 0x11d   : >> { %v603_v44 = vand.u32 2147483647, %v539_v1  ;;  %v604_v37 = vand.u32 2147483647, %v540_v46  ;;  %v599_v46 = vand.u32 2147483647, %v535_v53 }
 0x11e   : >> { %v1194_v3 = vmul.f32 %v1130_v40, %v735_v28  ;;  %v1195_v56 = vmul.f32 %v1131_v58, %v736_v25  ;;  %v600_v40 = vand.u32 2147483647, %v536_v20 }
 0x11f   : >> { %v858_v22 = vpop.permute.xlu1 %857  ;;  %v667_v16 = vsub.f32 1.0, %v603_v44  ;;  %v668_v51 = vsub.f32 1.0, %v604_v37  ;;  %v530_v44 = vsub.f32 %v1964_v61, %v432_v52 }
 0x120   : >> { %v934_v39 = vsub.f32 %v1944_v47, %v858_v22  ;;  %v935_v42 = vsub.f32 %v1948_v49, %v858_v22  ;;  %v1231_v54 = vpack.c.bf16 %v1195_v56, %v1193_v9  ;;  %v1230_v26 = vpack.c.bf16 %v1194_v3, %v1192_v15 }
 0x121   : >> { %v731_v2 = vmax.f32 %v667_v16, 0.0  ;;  %v732_v60 = vmax.f32 %v668_v51, 0.0  ;;  %v924_v9 = vsub.f32 %v1944_v47, %v1977_v4  ;;  %v925_v3 = vsub.f32 %v1948_v49, %v1977_v4 }
 0x122   : >> { %v998_v11 = vand.u32 2147483647, %v934_v39  ;;  %v999_v62 = vand.u32 2147483647, %v935_v42  ;;  %1267 = vmatprep.subr.bf16.mxu0 %v1231_v54  ;;  %v529_v56 = vsub.f32 %v1958_v57, %v432_v52  ;;  %v663_v42 = vsub.f32 1.0, %v599_v46 }
 0x123   : >> { %1268 = vmatpush2.bf16.msra.mxu0 %v1230_v26  ;;  %v664_v54 = vsub.f32 1.0, %v600_v40  ;;  %v988_v51 = vand.u32 2147483647, %v924_v9  ;;  %v989_v4 = vand.u32 2147483647, %v925_v3 }
 0x124   : >> { %v1062_v59 = vsub.f32 1.0, %v998_v11  ;;  %v1063_v23 = vsub.f32 1.0, %v999_v62  ;;  %v442_v0 = vpop.permute.xlu1 %441  ;;  %v593_v5 = vand.u32 2147483647, %v529_v56  ;;  %v594_v21 = vand.u32 2147483647, %v530_v44 }
 0x125   : >> { %v533_v36 = vsub.f32 %v1958_v57, %v442_v0  ;;  %v534_v41 = vsub.f32 %v1964_v61, %v442_v0  ;;  %v1053_v52 = vsub.f32 1.0, %v989_v4 }
 0x126   : >> { %v1126_v10 = vmax.f32 %v1062_v59, 0.0  ;;  %v1127_v7 = vmax.f32 %v1063_v23, 0.0 }
 0x127   : >> { %v597_v28 = vand.u32 2147483647, %v533_v36  ;;  %v598_v25 = vand.u32 2147483647, %v534_v41  ;;  %v427_v41 = vpop.permute.xlu0 %426  ;;  %v1117_v44 = vmax.f32 %v1053_v52, 0.0 }
 0x128   : >> { %v1190_v13 = vmul.f32 %v1126_v10, %v731_v2  ;;  %v1191_v48 = vmul.f32 %v1127_v7, %v732_v60  ;;  %v727_v60 = vmax.f32 %v663_v42, 0.0  ;;  %v728_v10 = vmax.f32 %v664_v54, 0.0 }
 0x129   : >> { %v846_v38 = vpop.permute.xlu1 %845  ;;  %v661_v22 = vsub.f32 1.0, %v597_v28  ;;  %v662_v39 = vsub.f32 1.0, %v598_v25 }
 0x12a   : >> { %v928_v8 = vsub.f32 %v1944_v47, %v846_v38  ;;  %v929_v63 = vsub.f32 %v1948_v49, %v846_v38  ;;  %v1229_v14 = vpack.c.bf16 %v1191_v48, %v1189_v12  ;;  %v1228_v1 = vpack.c.bf16 %v1190_v13, %v1188_v35 }
 0x12b   : >> { %v725_v59 = vmax.f32 %v661_v22, 0.0  ;;  %v726_v23 = vmax.f32 %v662_v39, 0.0  ;;  %v1052_v38 = vsub.f32 1.0, %v988_v51 }
 0x12c   : >> { %v992_v58 = vand.u32 2147483647, %v928_v8  ;;  %v993_v15 = vand.u32 2147483647, %v929_v63  ;;  %1269 = vmatprep.subr.bf16.mxu0 %v1229_v14  ;;  %v657_v8 = vsub.f32 1.0, %v593_v5  ;;  %v658_v63 = vsub.f32 1.0, %v594_v21 }
 0x12d   : >> { %v850_v37 = vpop.permute.xlu1 %849  ;;  %1270 = vmatpush2.bf16.msra.mxu0 %v1228_v1  ;;  %v1116_v3 = vmax.f32 %v1052_v38, 0.0 }
 0x12e   : >> { %v1056_v24 = vsub.f32 1.0, %v992_v58  ;;  %v1057_v55 = vsub.f32 1.0, %v993_v15  ;;  %v930_v45 = vsub.f32 %v1944_v47, %v850_v37  ;;  %v931_v27 = vsub.f32 %v1948_v49, %v850_v37 }
 0x12f   : >> { %v721_v56 = vmax.f32 %v657_v8, 0.0  ;;  %v722_v37 = vmax.f32 %v658_v63, 0.0 }
 0x130   : >> { %v994_v26 = vand.u32 2147483647, %v930_v45  ;;  %v995_v16 = vand.u32 2147483647, %v931_v27  ;;  %v1120_v11 = vmax.f32 %v1056_v24, 0.0  ;;  %v1121_v62 = vmax.f32 %v1057_v55, 0.0  ;;  %v412_v24 = vpop.permute.xlu0 %411 }
 0x132   : >> { %v1058_v6 = vsub.f32 1.0, %v994_v26  ;;  %v1059_v43 = vsub.f32 1.0, %v995_v16  ;;  %v437_v50 = vpop.permute.xlu1 %436  ;;  %v1184_v20 = vmul.f32 %v1120_v11, %v725_v59  ;;  %v1185_v36 = vmul.f32 %v1121_v62, %v726_v23 }
 0x133   : >> { %v531_v0 = vsub.f32 %v1958_v57, %v437_v50  ;;  %v532_v2 = vsub.f32 %v1964_v61, %v437_v50  ;;  %v1180_v26 = vmul.f32 %v1116_v3, %v721_v56  ;;  %v527_v16 = vsub.f32 %v1958_v57, %v427_v41 }
 0x134   : >> { %v1122_v7 = vmax.f32 %v1058_v6, 0.0  ;;  %v1123_v53 = vmax.f32 %v1059_v43, 0.0  ;;  %v1181_v11 = vmul.f32 %v1117_v44, %v722_v37  ;;  %v528_v62 = vsub.f32 %v1964_v61, %v427_v41  ;;  %v822_v43 = vpop.permute.xlu0 %821 }
 0x135   : >> { %v595_v13 = vand.u32 2147483647, %v531_v0  ;;  %v596_v48 = vand.u32 2147483647, %v532_v2  ;;  %v591_v2 = vand.u32 2147483647, %v527_v16  ;;  %v522_v41 = vsub.f32 %v1964_v61, %v412_v24 }
 0x136   : >> { %v1186_v35 = vmul.f32 %v1122_v7, %v727_v60  ;;  %v1187_v12 = vmul.f32 %v1123_v53, %v728_v10  ;;  %v592_v7 = vand.u32 2147483647, %v528_v62 }
 0x137   : >> { %v842_v14 = vpop.permute.xlu1 %841  ;;  %v659_v40 = vsub.f32 1.0, %v595_v13  ;;  %v660_v58 = vsub.f32 1.0, %v596_v48 }
 0x138   : >> { %v926_v1 = vsub.f32 %v1944_v47, %v842_v14  ;;  %v927_v46 = vsub.f32 %v1948_v49, %v842_v14  ;;  %v1227_v28 = vpack.c.bf16 %v1187_v12, %v1185_v36  ;;  %v1226_v25 = vpack.c.bf16 %v1186_v35, %v1184_v20 }
 0x139   : >> { %v723_v22 = vmax.f32 %v659_v40, 0.0  ;;  %v724_v39 = vmax.f32 %v660_v58, 0.0  ;;  %v521_v36 = vsub.f32 %v1958_v57, %v412_v24  ;;  %v916_v35 = vsub.f32 %v1944_v47, %v822_v43 }
 0x13a   : >> { %v990_v15 = vand.u32 2147483647, %v926_v1  ;;  %v991_v9 = vand.u32 2147483647, %v927_v46  ;;  %1271 = vmatprep.subr.bf16.mxu0 %v1227_v28  ;;  %v917_v12 = vsub.f32 %v1948_v49, %v822_v43  ;;  %v655_v1 = vsub.f32 1.0, %v591_v2 }
 0x13b   : >> { %1272 = vmatpush2.bf16.msra.mxu0 %v1226_v25  ;;  %v656_v46 = vsub.f32 1.0, %v592_v7  ;;  %v585_v40 = vand.u32 2147483647, %v521_v36  ;;  %v586_v58 = vand.u32 2147483647, %v522_v41 }
 0x13c   : >> { %v1054_v55 = vsub.f32 1.0, %v990_v15  ;;  %v1055_v45 = vsub.f32 1.0, %v991_v9  ;;  %v422_v27 = vpop.permute.xlu1 %421  ;;  %v980_v3 = vand.u32 2147483647, %v916_v35  ;;  %v981_v56 = vand.u32 2147483647, %v917_v12 }
 0x13d   : >> { %v525_v51 = vsub.f32 %v1958_v57, %v422_v27  ;;  %v526_v4 = vsub.f32 %v1964_v61, %v422_v27 }
 0x13e   : >> { %v1118_v42 = vmax.f32 %v1054_v55, 0.0  ;;  %v1119_v54 = vmax.f32 %v1055_v45, 0.0  ;;  %v1044_v43 = vsub.f32 1.0, %v980_v3  ;;  %v1290_v3 = vld [vmem:[%s1289_s25] sm:$0xf] }
 0x13f   : >> { %v589_v60 = vand.u32 2147483647, %v525_v51  ;;  %v590_v10 = vand.u32 2147483647, %v526_v4 }
 0x140   : >> { %v1182_v5 = vmul.f32 %v1118_v42, %v723_v22  ;;  %v1183_v21 = vmul.f32 %v1119_v54, %v724_v39  ;;  %v719_v39 = vmax.f32 %v655_v1, 0.0  ;;  %v720_v42 = vmax.f32 %v656_v46, 0.0 }
 0x141   : >> { %v830_v6 = vpop.permute.xlu1 %829  ;;  %v653_v63 = vsub.f32 1.0, %v589_v60  ;;  %v654_v14 = vsub.f32 1.0, %v590_v10  ;;  %v1108_v36 = vmax.f32 %v1044_v43, 0.0 }
 0x142   : >> { %v920_v50 = vsub.f32 %v1944_v47, %v830_v6  ;;  %v921_v59 = vsub.f32 %v1948_v49, %v830_v6  ;;  %v1225_v23 = vpack.c.bf16 %v1183_v21, %v1181_v11  ;;  %v1224_v0 = vpack.c.bf16 %v1182_v5, %v1180_v26 }
 0x143   : >> { %v717_v55 = vmax.f32 %v653_v63, 0.0  ;;  %v718_v45 = vmax.f32 %v654_v14, 0.0  ;;  %v649_v21 = vsub.f32 1.0, %v585_v40  ;;  %v650_v6 = vsub.f32 1.0, %v586_v58 }
 0x144   : >> { %v984_v53 = vand.u32 2147483647, %v920_v50  ;;  %v985_v20 = vand.u32 2147483647, %v921_v59  ;;  %1273 = vmatprep.subr.bf16.mxu0 %v1225_v23  ;;  %v1045_v50 = vsub.f32 1.0, %v981_v56 }
 0x145   : >> { %v834_v13 = vpop.permute.xlu1 %833  ;;  %1274 = vmatpush2.bf16.msra.mxu0 %v1224_v0 }
 0x146   : >> { %v1048_v48 = vsub.f32 1.0, %v984_v53  ;;  %v1049_v38 = vsub.f32 1.0, %v985_v20  ;;  %v922_v52 = vsub.f32 %v1944_v47, %v834_v13  ;;  %v923_v8 = vsub.f32 %v1948_v49, %v834_v13 }
 0x147   : >> { %v713_v53 = vmax.f32 %v649_v21, 0.0  ;;  %v714_v20 = vmax.f32 %v650_v6, 0.0  ;;  %v1109_v41 = vmax.f32 %v1045_v50, 0.0 }
 0x148   : >> { %v986_v28 = vand.u32 2147483647, %v922_v52  ;;  %v987_v25 = vand.u32 2147483647, %v923_v8  ;;  %v1112_v15 = vmax.f32 %v1048_v48, 0.0  ;;  %v1113_v9 = vmax.f32 %v1049_v38, 0.0 }
 0x149   : >> { %v1173_v52 = vmul.f32 %v1109_v41, %v714_v20 }
 0x14a   : >> { %v1050_v44 = vsub.f32 1.0, %v986_v28  ;;  %v1051_v37 = vsub.f32 1.0, %v987_v25  ;;  %v417_v24 = vpop.permute.xlu1 %416  ;;  %v1176_v16 = vmul.f32 %v1112_v15, %v717_v55  ;;  %v1177_v51 = vmul.f32 %v1113_v9, %v718_v45 }
 0x14b   : >> { %v523_v27 = vsub.f32 %v1958_v57, %v417_v24  ;;  %v524_v22 = vsub.f32 %v1964_v61, %v417_v24 }
 0x14c   : >> { %v1114_v54 = vmax.f32 %v1050_v44, 0.0  ;;  %v1115_v26 = vmax.f32 %v1051_v37, 0.0 }
 0x14d   : >> { %v587_v62 = vand.u32 2147483647, %v523_v27  ;;  %v588_v5 = vand.u32 2147483647, %v524_v22 }
 0x14e   : >> { %v1178_v4 = vmul.f32 %v1114_v54, %v719_v39  ;;  %v1179_v11 = vmul.f32 %v1115_v26, %v720_v42 }
 0x14f   : >> { %v826_v59 = vpop.permute.xlu1 %825  ;;  %v651_v2 = vsub.f32 1.0, %v587_v62  ;;  %v652_v60 = vsub.f32 1.0, %v588_v5 }
 0x150   : >> { %v918_v23 = vsub.f32 %v1944_v47, %v826_v59  ;;  %v919_v57 = vsub.f32 %v1948_v49, %v826_v59  ;;  %v1223_v61 = vpack.c.bf16 %v1179_v11, %v1177_v51  ;;  %v1222_v0 = vpack.c.bf16 %v1178_v4, %v1176_v16 }
 0x151   : >> { %v715_v13 = vmax.f32 %v651_v2, 0.0  ;;  %v716_v48 = vmax.f32 %v652_v60, 0.0  ;;  %v1172_v49 = vmul.f32 %v1108_v36, %v713_v53 }
 0x152   : >> { %v982_v10 = vand.u32 2147483647, %v918_v23  ;;  %v983_v7 = vand.u32 2147483647, %v919_v57  ;;  %1275 = vmatprep.subr.bf16.mxu0 %v1223_v61 }
 0x153   : >> { %1276 = vmatpush2.bf16.msra.mxu0 %v1222_v0 }
 0x154   : >> { %v1046_v35 = vsub.f32 1.0, %v982_v10  ;;  %v1047_v12 = vsub.f32 1.0, %v983_v7 }
 0x156   : >> { %v1110_v47 = vmax.f32 %v1046_v35, 0.0  ;;  %v1111_v38 = vmax.f32 %v1047_v12, 0.0 }
 0x158   : >> { %v1174_v8 = vmul.f32 %v1110_v47, %v715_v13  ;;  %v1175_v63 = vmul.f32 %v1111_v38, %v716_v48 }
 0x15a   : >> { %v1221_v14 = vpack.c.bf16 %v1175_v63, %v1173_v52  ;;  %v1220_v1 = vpack.c.bf16 %v1174_v8, %v1172_v49 }
 0x15c   : >> { %1277 = vmatprep.subr.bf16.mxu0 %v1221_v14 }
 0x15d   : >> { %1278 = vmatpush2.bf16.msra.mxu0 %v1220_v1 }
 0x160   : >> { %1280 = vmatmul.mubr.bf16.vlgmr.msra.gmra.mxu0 %v1842_v32 }
 0x220   : >> { %v1281_v46 = vpop.f32.mrf.mxu0 }
 0x221   : >> { %v1291_v28 = vpack.c.bf16 %v1281_v46, %v1281_v46 }
 0x222   : >> { %v1283_v25 = vpop.f32.mrf.mxu0 }
 0x223   : >> { %v1292_v40 = vpack.c.bf16 %v1283_v25, %v1283_v25  ;;  %v1299_v15 = vsel %vm1297_vm0, %v1291_v28, 0 }
 0x224   : >> { %v1285_v58 = vpop.f32.mrf.mxu0 }
 0x225   : >> { %1483 = vmatprep.subr.msk.bf16.mxu1 %vm1297_vm0, %v1292_v40 }
 0x226   : >> { %v1286_v9 = vpop.f32.mrf.mxu0  ;;  %1319 = vmatpush1.bf16.msra.mxu1 %v1299_v15 }
 0x229   : >> { %1484 = vmatmul.mubr.msk.bf16.vlgmr.msra.gmra.mxu1 %vm1293_vm1, %v1290_v3 }
 0x2e9   : >> { %v1338_v56 = vpop.f32.mrf.mxu1 }
 0x2ea   : >> { %v1345_v44 = vadd.f32 %v1618_v34, %v1338_v56  }
 0x2eb   : >> { %v1340_v37 = vpop.f32.mrf.mxu1  ;;  %295 = sbr.rel (!%p293_p5) target bundleno = 28 (0x1c), region = 79 }
 0x2ec   : >> { %v1346_v24 = vadd.f32 %v1614_v33, %v1340_v37   ;;  %v2292_v34 = vmov %v1345_v44  ;;  %1347 = vst [vmem:[%s1767_s14] sm:$0xff] (%p293_p5), %v1345_v44 }
 0x2ed   : >> { %v1342_v55 = vpop.f32.mrf.mxu1 }
 0x2ee   : >> { %v2291_v33 = vmov %v1346_v24  ;;  %1348 = vst [vmem:[%s1767_s14 + $0x8] sm:$0xff] (%p293_p5), %v1346_v24 }
 0x2ef   : >> { %v1343_v45 = vpop.f32.mrf.mxu1 }
 0x2f0 PF: > { %s14_s17 = sadd.s32 1, %s1610_s17   ;;  %s2293_s15 = smov %s1606_s16 }
 0x2f1   : > { %p11_p6 = scmp.ge.s32.totalorder %s14_s17, 4   ;;  %s2294_s16 = smov %s2296_s18 }
 0x2f3   :  { %13 = sbr.rel (!%p11_p6) target bundleno = 2 (0x2), region = 90 }

</bundles_post_ra>
